<compile_context>
chip_gen: v5e
topology: v5e:2x2
jax: 0.10.0
libtpu: 0.0.40
codegen_flags: <defaults>
</compile_context>

<pallas_src>
import math
import jax
import jax.numpy as jnp
from jax import lax
from jax.experimental import pallas as pl
from jax.experimental.pallas import tpu as pltpu

SPARSITY = 0.5          # args.sparsity (Args() is empty in the source; fixed here)
NUM_CLASSES = 10
LANE = 128
TB = 128                # batch tile (rows per grid step)


def _round_up(x, m):
    return (x + m - 1) // m * m


# ---------------------------------------------------------------------------
# GetSubnet (top-k binary mask from score magnitudes).  Needs a global sort,
# so it stays in plain JAX; only the *application* of the mask is in-kernel.
# ---------------------------------------------------------------------------
def get_subnet(scores: jnp.ndarray, k: float) -> jnp.ndarray:
    flat = jnp.abs(scores).reshape(-1)
    j = int((1.0 - k) * flat.size)            # lowest j magnitudes -> 0, rest -> 1
    idx = jnp.argsort(flat)
    mask = jnp.zeros_like(flat).at[idx[j:]].set(1.0)
    return mask.reshape(scores.shape)


# ---------------------------------------------------------------------------
# Pallas kernel: (mask*w1) matmul -> relu -> (mask*w2) matmul -> log_softmax
# Shapes (per grid step): x (TB,Kp) bf16, w1/m1 (N2p,Kp) bf16,
#                         w2/m2 (Np,N2p) bf16, out (TB,Np=128) f32.
# ---------------------------------------------------------------------------
def net_kernel(x_ref, w1_ref, m1_ref, w2_ref, m2_ref, o_ref):
    x = x_ref[...]                                             # (TB, Kp)  bf16
    w1 = w1_ref[...] * m1_ref[...]                             # supermask on VPU
    # h = x @ w1.T : contract K of both operands (trans-B matmul on the MXU).
    h = lax.dot_general(x, w1, (((1,), (1,)), ((), ())),
                        preferred_element_type=jnp.float32)    # (TB, N2p) f32
    h = jnp.maximum(h, 0.0)                                    # relu (f32)

    w2 = w2_ref[...] * m2_ref[...]                             # (Np, N2p) bf16
    logits = lax.dot_general(h.astype(jnp.bfloat16), w2,
                             (((1,), (1,)), ((), ())),
                             preferred_element_type=jnp.float32)  # (TB, Np) f32

    # log_softmax over the real NUM_CLASSES lanes only (lanes >= 10 are padding).
    lane_ids = lax.broadcasted_iota(jnp.int32, logits.shape, 1)
    valid = lane_ids < NUM_CLASSES
    m = jnp.max(jnp.where(valid, logits, jnp.float32(-1e30)),
                axis=-1, keepdims=True)
    shifted = logits - m
    e = jnp.where(valid, jnp.exp(shifted), 0.0)
    lse = jnp.log(jnp.sum(e, axis=-1, keepdims=True))
    o_ref[...] = (shifted - lse).astype(o_ref.dtype)           # lane-dense store


# ---------------------------------------------------------------------------
# Wrapper
# ---------------------------------------------------------------------------
def net_forward(x_nchw, w1, scores1, w2, scores2, sparsity=SPARSITY):
    """x_nchw: (B, 1, 28, 28) f32.  w1: (n2, 784), w2: (10, n2), PyTorch layout."""
    B = x_nchw.shape[0]
    n2, k_in = w1.shape
    assert k_in == 28 * 28 and w2.shape == (NUM_CLASSES, n2)

    Kp = _round_up(k_in, LANE)            # 784 -> 896 (7 x 128)
    N2p = _round_up(n2, LANE)             # hidden dim -> multiple of 128
    Np = LANE                             # lane-dense output block (10 -> 128)
    Bp = _round_up(B, TB)                 # batch padded to the tile

    # flatten(x, 1), zero-pad (exact for matmul+relu), cast for the MXU.
    x2 = x_nchw.reshape(B, -1)
    xp = jnp.pad(x2, ((0, Bp - B), (0, Kp - k_in))).astype(jnp.bfloat16)

    # Binary top-k masks from |scores| (global sort stays in plain JAX).
    m1 = get_subnet(scores1, sparsity)
    m2 = get_subnet(scores2, sparsity)

    # Zero-pad weights/masks to aligned shapes; mask multiply happens in-kernel.
    w1p = jnp.pad(w1, ((0, N2p - n2), (0, Kp - k_in))).astype(jnp.bfloat16)
    m1p = jnp.pad(m1, ((0, N2p - n2), (0, Kp - k_in))).astype(jnp.bfloat16)
    w2p = jnp.pad(w2, ((0, Np - NUM_CLASSES), (0, N2p - n2))).astype(jnp.bfloat16)
    m2p = jnp.pad(m2, ((0, Np - NUM_CLASSES), (0, N2p - n2))).astype(jnp.bfloat16)

    grid = (Bp // TB,)
    flops = 2 * Bp * Kp * N2p + 2 * Bp * N2p * Np
    bytes_accessed = (xp.size + w1p.size + m1p.size + w2p.size + m2p.size) * 2 \
                     + Bp * Np * 4

    out = pl.pallas_call(
        net_kernel,
        out_shape=jax.ShapeDtypeStruct((Bp, Np), jnp.float32),
        grid=grid,
        in_specs=[
            pl.BlockSpec((TB, Kp), lambda i: (i, 0)),     # batch-tiled x
            pl.BlockSpec((N2p, Kp), lambda i: (0, 0)),    # resident w1
            pl.BlockSpec((N2p, Kp), lambda i: (0, 0)),    # resident mask1
            pl.BlockSpec((Np, N2p), lambda i: (0, 0)),    # resident w2
            pl.BlockSpec((Np, N2p), lambda i: (0, 0)),    # resident mask2
        ],
        out_specs=pl.BlockSpec((TB, Np), lambda i: (i, 0)),
        compiler_params=pltpu.CompilerParams(
            dimension_semantics=("parallel",)),
        cost_estimate=pl.CostEstimate(
            flops=flops,
            transcendentals=Bp * NUM_CLASSES,
            bytes_accessed=bytes_accessed),
    )(xp, w1p, m1p, w2p, m2p)

    return out[:B, :NUM_CLASSES]


# ---------------------------------------------------------------------------
# Pure-JAX reference (bf16-matched) for correctness checking.
# ---------------------------------------------------------------------------
def reference_forward(x_nchw, w1, s1, w2, s2, sparsity=SPARSITY):
    x = x_nchw.reshape(x_nchw.shape[0], -1)
    w1m = (w1 * get_subnet(s1, sparsity)).astype(jnp.bfloat16).astype(jnp.float32)
    w2m = (w2 * get_subnet(s2, sparsity)).astype(jnp.bfloat16).astype(jnp.float32)
    xb = x.astype(jnp.bfloat16).astype(jnp.float32)
    h = jnp.maximum(xb @ w1m.T, 0.0)
    logits = h.astype(jnp.bfloat16).astype(jnp.float32) @ w2m.T
    return jax.nn.log_softmax(logits, axis=-1)


# ---------------------------------------------------------------------------
# Deterministic parameter init (mirrors SupermaskLinear.__init__ shapes)
# ---------------------------------------------------------------------------
def init_params(key, n2):
    in1, out1 = 28 * 28, n2
    in2, out2 = n2, 10
    k1, k2, k3, k4 = jax.random.split(key, 4)

    # weight: kaiming_normal_(mode='fan_in', nonlinearity='relu') -> N(0, 2/fan_in)
    w1 = jax.random.normal(k1, (out1, in1), jnp.float32) * math.sqrt(2.0 / in1)
    w2 = jax.random.normal(k2, (out2, in2), jnp.float32) * math.sqrt(2.0 / in2)

    # scores: kaiming_uniform_(a=sqrt(5)) -> U(-1/sqrt(fan_in), 1/sqrt(fan_in))
    b1 = 1.0 / math.sqrt(in1)
    b2 = 1.0 / math.sqrt(in2)
    s1 = jax.random.uniform(k3, (out1, in1), jnp.float32, -b1, b1)
    s2 = jax.random.uniform(k4, (out2, in2), jnp.float32, -b2, b2)
    return w1, s1, w2, s2


if __name__ == "__main__":
    key = jax.random.PRNGKey(0)
    kx, kp = jax.random.split(key)

    B, n2 = 2, 32
    x = jax.random.normal(kx, (B, 1, 28, 28), jnp.float32)      # NCHW MNIST-shaped
    w1, s1, w2, s2 = init_params(kp, n2)

    out = net_forward(x, w1, s1, w2, s2)
    out = jax.block_until_ready(out)

    # sanity: shape, log_softmax rows sum (in prob space) to ~1, matches reference
    assert out.shape == (B, NUM_CLASSES)
    assert jnp.allclose(jnp.sum(jnp.exp(out), axis=-1), 1.0, atol=1e-3)
    ref = reference_forward(x, w1, s1, w2, s2)
    assert jnp.allclose(out, ref, atol=5e-2), float(jnp.max(jnp.abs(out - ref)))

    print("KERNEL_OK")
</pallas_src>

<mosaic_0001>
module attributes {stable_mosaic.version = 11 : i64} {
  func.func @net_kernel(%arg0: i32, %arg1: memref<128x896xbf16, #tpu.memory_space<vmem>>, %arg2: memref<128x896xbf16, #tpu.memory_space<vmem>>, %arg3: memref<128x896xbf16, #tpu.memory_space<vmem>>, %arg4: memref<128x128xbf16, #tpu.memory_space<vmem>>, %arg5: memref<128x128xbf16, #tpu.memory_space<vmem>>, %arg6: memref<128x128xf32, #tpu.memory_space<vmem>>) attributes {dimension_semantics = [#tpu.dimension_semantics<parallel>], iteration_bounds = array<i64: 1>, scalar_prefetch = 0 : i64, scratch_operands = 0 : i64, tpu.core_type = #tpu.core_type<tc>, window_params = [{transform_indices = @transform_0, window_bounds = array<i64: 128, 896>}, {pipeline_mode = #tpu.pipeline_mode<synchronous>, transform_indices = @transform_1, window_bounds = array<i64: 128, 896>}, {pipeline_mode = #tpu.pipeline_mode<synchronous>, transform_indices = @transform_2, window_bounds = array<i64: 128, 896>}, {pipeline_mode = #tpu.pipeline_mode<synchronous>, transform_indices = @transform_3, window_bounds = array<i64: 128, 128>}, {pipeline_mode = #tpu.pipeline_mode<synchronous>, transform_indices = @transform_4, window_bounds = array<i64: 128, 128>}, {transform_indices = @transform_5, window_bounds = array<i64: 128, 128>}]} {
    %c0 = arith.constant 0 : index
    %c0_0 = arith.constant 0 : index
    %0 = vector.load %arg1[%c0, %c0_0] : memref<128x896xbf16, #tpu.memory_space<vmem>>, vector<128x896xbf16>
    %c0_1 = arith.constant 0 : index
    %c0_2 = arith.constant 0 : index
    %1 = vector.load %arg2[%c0_1, %c0_2] : memref<128x896xbf16, #tpu.memory_space<vmem>>, vector<128x896xbf16>
    %c0_3 = arith.constant 0 : index
    %c0_4 = arith.constant 0 : index
    %2 = vector.load %arg3[%c0_3, %c0_4] : memref<128x896xbf16, #tpu.memory_space<vmem>>, vector<128x896xbf16>
    %3 = arith.mulf %1, %2 : vector<128x896xbf16>
    %cst = arith.constant dense<0.000000e+00> : vector<128x128xf32>
    %4 = tpu.matmul %0, %3, %cst {dimension_numbers = #tpu.dot_dimension_numbers<[1], [1], [0], [0], [0, 0, 1, 0], [], []>} : vector<128x896xbf16>, vector<128x896xbf16>, vector<128x128xf32> -> vector<128x128xf32>
    %cst_5 = arith.constant 0.000000e+00 : f32
    %5 = vector.broadcast %cst_5 : f32 to vector<128x128xf32>
    %6 = arith.maximumf %4, %5 : vector<128x128xf32>
    %c0_6 = arith.constant 0 : index
    %c0_7 = arith.constant 0 : index
    %7 = vector.load %arg4[%c0_6, %c0_7] : memref<128x128xbf16, #tpu.memory_space<vmem>>, vector<128x128xbf16>
    %c0_8 = arith.constant 0 : index
    %c0_9 = arith.constant 0 : index
    %8 = vector.load %arg5[%c0_8, %c0_9] : memref<128x128xbf16, #tpu.memory_space<vmem>>, vector<128x128xbf16>
    %9 = arith.mulf %7, %8 : vector<128x128xbf16>
    %10 = arith.truncf %6 : vector<128x128xf32> to vector<128x128xbf16>
    %cst_10 = arith.constant dense<0.000000e+00> : vector<128x128xf32>
    %11 = tpu.matmul %10, %9, %cst_10 {dimension_numbers = #tpu.dot_dimension_numbers<[1], [1], [0], [0], [0, 0, 1, 0], [], []>} : vector<128x128xbf16>, vector<128x128xbf16>, vector<128x128xf32> -> vector<128x128xf32>
    %12 = tpu.iota {dimensions = array<i32: 1>} : vector<128x128xi32>
    %c10_i32 = arith.constant 10 : i32
    %13 = vector.broadcast %c10_i32 : i32 to vector<128x128xi32>
    %14 = arith.cmpi slt, %12, %13 : vector<128x128xi32>
    %cst_11 = arith.constant -1.000000e+30 : f32
    %15 = vector.broadcast %cst_11 : f32 to vector<128x128xf32>
    %16 = arith.select %14, %11, %15 : vector<128x128xi1>, vector<128x128xf32>
    %cst_12 = arith.constant dense<0xFF800000> : vector<128xf32>
    %17 = vector.multi_reduction <maximumf>, %16, %cst_12 [1] : vector<128x128xf32> to vector<128xf32>
    %18 = vector.shape_cast %17 : vector<128xf32> to vector<128x1xf32>
    %19 = vector.broadcast %18 : vector<128x1xf32> to vector<128x128xf32>
    %20 = arith.subf %11, %19 : vector<128x128xf32>
    %21 = math.exp %20 : vector<128x128xf32>
    %cst_13 = arith.constant 0.000000e+00 : f32
    %22 = vector.broadcast %cst_13 : f32 to vector<128x128xf32>
    %23 = arith.select %14, %21, %22 : vector<128x128xi1>, vector<128x128xf32>
    %cst_14 = arith.constant dense<0.000000e+00> : vector<128xf32>
    %24 = vector.multi_reduction <add>, %23, %cst_14 [1] : vector<128x128xf32> to vector<128xf32>
    %25 = vector.shape_cast %24 : vector<128xf32> to vector<128x1xf32>
    %26 = math.log %25 : vector<128x1xf32>
    %27 = vector.broadcast %26 : vector<128x1xf32> to vector<128x128xf32>
    %28 = arith.subf %20, %27 : vector<128x128xf32>
    %c0_15 = arith.constant 0 : index
    %c0_16 = arith.constant 0 : index
    %29 = vector.load %arg6[%c0_15, %c0_16] : memref<128x128xf32, #tpu.memory_space<vmem>>, vector<128x128xf32>
    tpu.vector_store %arg6[%c0_15, %c0_16], %28 {strides = array<i32>} : memref<128x128xf32, #tpu.memory_space<vmem>>, vector<128x128xf32>,
    return
  }
  func.func @transform_0(%arg0: i32) -> (i32, i32) {
    %c0_i32 = arith.constant 0 : i32
    %c0_i32_0 = arith.constant 0 : i32
    return %arg0, %c0_i32 : i32, i32
  }
  func.func @transform_1(%arg0: i32) -> (i32, i32) {
    %c0_i32 = arith.constant 0 : i32
    %c0_i32_0 = arith.constant 0 : i32
    %c0_i32_1 = arith.constant 0 : i32
    return %c0_i32, %c0_i32_0 : i32, i32
  }
  func.func @transform_2(%arg0: i32) -> (i32, i32) {
    %c0_i32 = arith.constant 0 : i32
    %c0_i32_0 = arith.constant 0 : i32
    %c0_i32_1 = arith.constant 0 : i32
    return %c0_i32, %c0_i32_0 : i32, i32
  }
  func.func @transform_3(%arg0: i32) -> (i32, i32) {
    %c0_i32 = arith.constant 0 : i32
    %c0_i32_0 = arith.constant 0 : i32
    %c0_i32_1 = arith.constant 0 : i32
    return %c0_i32, %c0_i32_0 : i32, i32
  }
  func.func @transform_4(%arg0: i32) -> (i32, i32) {
    %c0_i32 = arith.constant 0 : i32
    %c0_i32_0 = arith.constant 0 : i32
    %c0_i32_1 = arith.constant 0 : i32
    return %c0_i32, %c0_i32_0 : i32, i32
  }
  func.func @transform_5(%arg0: i32) -> (i32, i32) {
    %c0_i32 = arith.constant 0 : i32
    %c0_i32_0 = arith.constant 0 : i32
    return %arg0, %c0_i32 : i32, i32
  }
}

</mosaic_0001>

<bundles_post_ra>
// kernel: tpu_custom_call.1
= control target key start
LH: loop header
LB: loop body
LE: loop exit
PB: predicated region body
PF: predicated region fallthrough
CT: control target
= control target key end

     0   :  { %10 = vsyncpa [#allocation3], 0  ;;  %s2597_s0 = inlined_call_operand.hbm [shape: bf16[128,896], index: 0, kind: input, shape index: {}]   ;;  %s2598_s1 = inlined_call_operand.hbm [shape: bf16[128,896], index: 1, kind: input, shape index: {}]   ;;  %s2599_s2 = inlined_call_operand.hbm [shape: bf16[128,896], index: 2, kind: input, shape index: {}]   ;;  %s2600_s3 = inlined_call_operand.hbm [shape: bf16[128,128], index: 3, kind: input, shape index: {}]   ;;  %s2601_s4 = inlined_call_operand.hbm [shape: bf16[128,128], index: 4, kind: input, shape index: {}]   ;;  %s2602_s5 = inlined_call_operand.hbm [shape: f32[128,128], index: 5, kind: output, shape index: {}]  }
   0x1   :  { %11 = vsyncpa [#allocation6], 0 }
   0x2   :  { %12 = vsyncpa [#allocation9], 0 }
   0x3   :  { %13 = vsyncpa [#allocation4], 0  ;;  %s31_s20 = sshll.u32 %s2598_s1, 4  ;;  %s2293_s21 = smov [#allocation5]   ;;  %s32_s20 = int_to_ptr.hbm [resolvable:$true] %s31_s20 }
   0x4   :  { %s33_s22 = sshll.u32 %s2293_s21, 4  ;;  %s57_s25 = sshll.u32 %s2600_s3, 4  ;;  %s34_s22 = int_to_ptr.vmem [resolvable:$true] %s33_s22  ;;  %s58_s25 = int_to_ptr.hbm [resolvable:$true] %s57_s25 }
   0x5   :  { %s2294_s26 = smov 448   ;;  %s2295_s27 = smov 28  }
   0x6   :  { %39 = dma.hbm_to_vmem [thread:$0]  %s32_s20, 7168, %s34_s22, [#allocation6], %s2294_s26, %s2294_s26, %s2295_s27  }
   0x7   :  { %s2296_s28 = smov [#allocation8]   ;;  %s2297_s30 = smov 64  }
   0x8   :  { %s59_s29 = sshll.u32 %s2296_s28, 4  ;;  %s2298_s6 = smov 4   ;;  %s60_s29 = int_to_ptr.vmem [resolvable:$true] %s59_s29 }
   0x9   :  { %65 = dma.hbm_to_vmem [thread:$0]  %s58_s25, 1024, %s60_s29, [#allocation9], %s2297_s30, %s2297_s30, %s2298_s6  }
   0xa   :  { %s18_s8 = sshll.u32 %s2597_s0, 4  ;;  %s2299_s9 = smov [#allocation2]   ;;  %s19_s8 = int_to_ptr.hbm [resolvable:$true] %s18_s8 }
   0xb   :  { %s20_s10 = sshll.u32 %s2299_s9, 4  ;;  %s44_s12 = sshll.u32 %s2599_s2, 4  ;;  %s21_s10 = int_to_ptr.vmem [resolvable:$true] %s20_s10  ;;  %s45_s12 = int_to_ptr.hbm [resolvable:$true] %s44_s12 }
   0xc   :  { %26 = dma.hbm_to_vmem [thread:$0]  %s19_s8, 7168, %s21_s10, [#allocation3], %s2294_s26, %s2294_s26, %s2295_s27  }
   0xd   :  { %s2300_s13 = smov [#allocation7]   ;;  %s70_s17 = sshll.u32 %s2601_s4, 4  ;;  %s71_s17 = int_to_ptr.hbm [resolvable:$true] %s70_s17 }
   0xe   :  { %s46_s14 = sshll.u32 %s2300_s13, 4  ;;  %s2301_s0 = smov [#allocation10]   ;;  %s47_s14 = int_to_ptr.vmem [resolvable:$true] %s46_s14 }
   0xf   :  { %52 = dma.hbm_to_vmem [thread:$0]  %s45_s12, 7168, %s47_s14, [#allocation6], %s2294_s26, %s2294_s26, %s2295_s27  }
  0x10   :  { %s72_s18 = sshll.u32 %s2301_s0, 4  ;;  %s73_s18 = int_to_ptr.vmem [resolvable:$true] %s72_s18 }
  0x11   :  { %78 = dma.hbm_to_vmem [thread:$0]  %s71_s17, 1024, %s73_s18, [#allocation9], %s2297_s30, %s2297_s30, %s2298_s6  }
  0x12   :  { %2285 = dma.done.wait [#allocation3], 7168  }
  0x13   :  { %2286 = vsyncadd [#allocation3], 4294960128 }
  0x14   :  { %2287 = dma.done.wait [#allocation6], 14336  }
  0x15   :  { %2288 = vsyncadd [#allocation6], 4294952960 }
  0x16   :  { %2289 = dma.done.wait [#allocation9], 2048  }
  0x17   :  { %2290 = vsyncadd [#allocation9], 4294965248  ;;  %v219_v0 = vld [vmem:[#allocation5 + $0x188] sm:$0xff]  ;;  %v220_v8 = vld [vmem:[#allocation5 + $0x190] sm:$0xff]  ;;  %s2302_s2 = smov [#allocation11]   ;;  %s1692_s21 = sshll.u32 %s2602_s5, 4  ;;  %s1693_s21 = int_to_ptr.hbm [resolvable:$true] %s1692_s21 }
  0x18   :  { %v223_v1 = vld [vmem:[#allocation5 + $0x1a4] sm:$0xff]  ;;  %v389_v4 = vunpack.c.l.bf16 %v219_v0  ;;  %v390_v7 = vunpack.c.h.bf16 %v219_v0  ;;  %v224_v9 = vld [vmem:[#allocation5 + $0x1ac] sm:$0xff]  ;;  %v391_v17 = vunpack.c.l.bf16 %v220_v8  ;;  %v392_v28 = vunpack.c.h.bf16 %v220_v8  ;;  %v212_v40 = vld [vmem:[#allocation5 + $0x158] sm:$0xff]  ;;  %s1690_s4 = sshll.u32 %s2302_s2, 4  ;;  %s2303_s22 = smov 128   ;;  %s1691_s4 = int_to_ptr.vmem [resolvable:$true] %s1690_s4 }
  0x19   :  { %v283_v2 = vld [vmem:[#allocation7 + $0x188] sm:$0xff]  ;;  %v396_v5 = vunpack.c.l.bf16 %v223_v1  ;;  %v397_v11 = vunpack.c.h.bf16 %v223_v1  ;;  %v284_v14 = vld [vmem:[#allocation7 + $0x190] sm:$0xff]  ;;  %v398_v18 = vunpack.c.l.bf16 %v224_v9  ;;  %v399_v29 = vunpack.c.h.bf16 %v224_v9  ;;  %v276_v46 = vld [vmem:[#allocation7 + $0x158] sm:$0xff]  ;;  %s2304_s23 = smov 8  }
  0x1a   :  { %v287_v3 = vld [vmem:[#allocation7 + $0x1a4] sm:$0xff]  ;;  %v501_v6 = vunpack.c.l.bf16 %v283_v2  ;;  %v502_v12 = vunpack.c.h.bf16 %v283_v2  ;;  %v288_v15 = vld [vmem:[#allocation7 + $0x1ac] sm:$0xff]  ;;  %v503_v19 = vunpack.c.l.bf16 %v284_v14  ;;  %v504_v30 = vunpack.c.h.bf16 %v284_v14  ;;  %v216_v41 = vld [vmem:[#allocation5 + $0x174] sm:$0xff] }
  0x1b   :  { %v508_v10 = vunpack.c.l.bf16 %v287_v3  ;;  %v509_v13 = vunpack.c.h.bf16 %v287_v3  ;;  %v510_v23 = vunpack.c.l.bf16 %v288_v15  ;;  %v211_v24 = vld [vmem:[#allocation5 + $0x150] sm:$0xff]  ;;  %v511_v35 = vunpack.c.h.bf16 %v288_v15  ;;  %v203_v60 = vld [vmem:[#allocation5 + $0x118] sm:$0xff] }
  0x1c   :  { %v613_v16 = vmul.f32 %v501_v6, %v389_v4  ;;  %v614_v21 = vmul.f32 %v502_v12, %v390_v7  ;;  %v215_v25 = vld [vmem:[#allocation5 + $0x16c] sm:$0xff]  ;;  %v615_v27 = vmul.f32 %v503_v19, %v391_v17  ;;  %v616_v36 = vmul.f32 %v504_v30, %v392_v28  ;;  %v280_v47 = vld [vmem:[#allocation7 + $0x174] sm:$0xff]  ;;  %v204_v12 = vld [vmem:[#allocation5 + $0x120] sm:$0xff] }
  0x1d   :  { %v620_v20 = vmul.f32 %v508_v10, %v396_v5  ;;  %v621_v22 = vmul.f32 %v509_v13, %v397_v11  ;;  %v275_v26 = vld [vmem:[#allocation7 + $0x150] sm:$0xff]  ;;  %v622_v34 = vmul.f32 %v510_v23, %v398_v18  ;;  %v375_v37 = vunpack.c.l.bf16 %v211_v24  ;;  %v267_v62 = vld [vmem:[#allocation7 + $0x118] sm:$0xff]  ;;  %v268_v18 = vld [vmem:[#allocation7 + $0x120] sm:$0xff] }
  0x1e   :  { %v279_v31 = vld [vmem:[#allocation7 + $0x16c] sm:$0xff]  ;;  %v382_v38 = vunpack.c.l.bf16 %v215_v25  ;;  %v487_v39 = vunpack.c.l.bf16 %v275_v26  ;;  %v623_v43 = vmul.f32 %v511_v35, %v399_v29  ;;  %v376_v45 = vunpack.c.h.bf16 %v211_v24  ;;  %v207_v61 = vld [vmem:[#allocation5 + $0x134] sm:$0xff]  ;;  %v208_v13 = vld [vmem:[#allocation5 + $0x13c] sm:$0xff] }
  0x1f   :  { %v676_v32 = vpack.c.bf16 %v620_v20, %v613_v16  ;;  %v677_v33 = vpack.c.bf16 %v621_v22, %v614_v21  ;;  %v678_v42 = vpack.c.bf16 %v622_v34, %v615_v27  ;;  %v494_v44 = vunpack.c.l.bf16 %v279_v31  ;;  %v271_v3 = vld [vmem:[#allocation7 + $0x134] sm:$0xff]  ;;  %v272_v19 = vld [vmem:[#allocation7 + $0x13c] sm:$0xff] }
  0x20   :  { %v599_v48 = vmul.f32 %v487_v39, %v375_v37  ;;  %v383_v49 = vunpack.c.h.bf16 %v215_v25  ;;  %v488_v50 = vunpack.c.h.bf16 %v275_v26  ;;  %v495_v51 = vunpack.c.h.bf16 %v279_v31  ;;  %v259_v34 = vld [vmem:[#allocation7 + $0xe0] sm:$0xff] }
  0x21   :  { %971 = vmatpush.bf16.xpose.msra.mxu0 %v676_v32  ;;  %1020 = vmatpush.bf16.xpose.msra.mxu1 %v677_v33  ;;  %v679_v52 = vpack.c.bf16 %v623_v43, %v616_v36  ;;  %v606_v53 = vmul.f32 %v494_v44, %v382_v38  ;;  %v377_v54 = vunpack.c.l.bf16 %v212_v40  ;;  %v384_v55 = vunpack.c.l.bf16 %v216_v41  ;;  %v195_v32 = vld [vmem:[#allocation5 + $0xe0] sm:$0xff] }
  0x22   :  { %1069 = vmatpush.bf16.xpose.msra.mxu2 %v678_v42  ;;  %v600_v56 = vmul.f32 %v488_v50, %v376_v45  ;;  %v607_v57 = vmul.f32 %v495_v51, %v383_v49  ;;  %v489_v58 = vunpack.c.l.bf16 %v276_v46  ;;  %v496_v59 = vunpack.c.l.bf16 %v280_v47  ;;  %v199_v33 = vld [vmem:[#allocation5 + $0xfc] sm:$0xff]  ;;  %v200_v49 = vld [vmem:[#allocation5 + $0x104] sm:$0xff] }
  0x23   :  { %1118 = vmatpush.bf16.xpose.msra.mxu3 %v679_v52  ;;  %v669_v63 = vpack.c.bf16 %v606_v53, %v599_v48  ;;  %v378_v0 = vunpack.c.h.bf16 %v212_v40  ;;  %v385_v1 = vunpack.c.h.bf16 %v216_v41  ;;  %v490_v2 = vunpack.c.h.bf16 %v276_v46  ;;  %v263_v39 = vld [vmem:[#allocation7 + $0xfc] sm:$0xff]  ;;  %v196_v48 = vld [vmem:[#allocation5 + $0xe8] sm:$0xff] }
  0x24   :  { %v670_v4 = vpack.c.bf16 %v607_v57, %v600_v56  ;;  %v601_v5 = vmul.f32 %v489_v58, %v377_v54  ;;  %v608_v6 = vmul.f32 %v496_v59, %v384_v55  ;;  %v497_v7 = vunpack.c.h.bf16 %v280_v47  ;;  %v260_v54 = vld [vmem:[#allocation7 + $0xe8] sm:$0xff] }
  0x25   :  { %v602_v8 = vmul.f32 %v490_v2, %v378_v0  ;;  %v361_v9 = vunpack.c.l.bf16 %v203_v60  ;;  %v368_v10 = vunpack.c.l.bf16 %v207_v61  ;;  %v473_v11 = vunpack.c.l.bf16 %v267_v62  ;;  %v264_v55 = vld [vmem:[#allocation7 + $0x104] sm:$0xff] }
  0x26   :  { %v671_v14 = vpack.c.bf16 %v608_v6, %v601_v5  ;;  %v609_v15 = vmul.f32 %v497_v7, %v385_v1  ;;  %v480_v16 = vunpack.c.l.bf16 %v271_v3  ;;  %v362_v17 = vunpack.c.h.bf16 %v203_v60  ;;  %v191_v5 = vld [vmem:[#allocation5 + $0xc4] sm:$0xff] }
  0x27   :  { %v585_v20 = vmul.f32 %v473_v11, %v361_v9  ;;  %v369_v21 = vunpack.c.h.bf16 %v207_v61  ;;  %v474_v22 = vunpack.c.h.bf16 %v267_v62  ;;  %v481_v23 = vunpack.c.h.bf16 %v271_v3  ;;  %v251_v6 = vld [vmem:[#allocation7 + $0xa8] sm:$0xff] }
  0x28   :  { %v672_v24 = vpack.c.bf16 %v609_v15, %v602_v8  ;;  %v592_v25 = vmul.f32 %v480_v16, %v368_v10  ;;  %v363_v26 = vunpack.c.l.bf16 %v204_v12  ;;  %v370_v27 = vunpack.c.l.bf16 %v208_v13  ;;  %v255_v11 = vld [vmem:[#allocation7 + $0xc4] sm:$0xff] }
  0x29   :  { %972 = vmatpush.bf16.xpose.msra.mxu0 %v669_v63  ;;  %1021 = vmatpush.bf16.xpose.msra.mxu1 %v670_v4  ;;  %v586_v28 = vmul.f32 %v474_v22, %v362_v17  ;;  %v593_v29 = vmul.f32 %v481_v23, %v369_v21  ;;  %v475_v30 = vunpack.c.l.bf16 %v268_v18  ;;  %v482_v31 = vunpack.c.l.bf16 %v272_v19  ;;  %v187_v4 = vld [vmem:[#allocation5 + $0xa8] sm:$0xff] }
  0x2a   :  { %1070 = vmatpush.bf16.xpose.msra.mxu2 %v671_v14  ;;  %v662_v35 = vpack.c.bf16 %v592_v25, %v585_v20  ;;  %v364_v36 = vunpack.c.h.bf16 %v204_v12  ;;  %v371_v37 = vunpack.c.h.bf16 %v208_v13  ;;  %v476_v38 = vunpack.c.h.bf16 %v268_v18  ;;  %v188_v20 = vld [vmem:[#allocation5 + $0xb0] sm:$0xff] }
  0x2b   :  { %1119 = vmatpush.bf16.xpose.msra.mxu3 %v672_v24  ;;  %v663_v40 = vpack.c.bf16 %v593_v29, %v586_v28  ;;  %v587_v41 = vmul.f32 %v475_v30, %v363_v26  ;;  %v594_v42 = vmul.f32 %v482_v31, %v370_v27  ;;  %v483_v43 = vunpack.c.h.bf16 %v272_v19  ;;  %v192_v21 = vld [vmem:[#allocation5 + $0xcc] sm:$0xff] }
  0x2c   :  { %v588_v44 = vmul.f32 %v476_v38, %v364_v36  ;;  %v347_v45 = vunpack.c.l.bf16 %v195_v32  ;;  %v354_v46 = vunpack.c.l.bf16 %v199_v33  ;;  %v459_v47 = vunpack.c.l.bf16 %v259_v34  ;;  %v252_v26 = vld [vmem:[#allocation7 + $0xb0] sm:$0xff] }
  0x2d   :  { %v664_v50 = vpack.c.bf16 %v594_v42, %v587_v41  ;;  %v595_v51 = vmul.f32 %v483_v43, %v371_v37  ;;  %v466_v52 = vunpack.c.l.bf16 %v263_v39  ;;  %v348_v53 = vunpack.c.h.bf16 %v195_v32  ;;  %v256_v27 = vld [vmem:[#allocation7 + $0xcc] sm:$0xff] }
  0x2e   :  { %v571_v56 = vmul.f32 %v459_v47, %v347_v45  ;;  %v355_v57 = vunpack.c.h.bf16 %v199_v33  ;;  %v460_v58 = vunpack.c.h.bf16 %v259_v34  ;;  %v467_v59 = vunpack.c.h.bf16 %v263_v39  ;;  %v183_v41 = vld [vmem:[#allocation5 + $0x8c] sm:$0xff] }
  0x2f   :  { %v665_v60 = vpack.c.bf16 %v595_v51, %v588_v44  ;;  %v578_v61 = vmul.f32 %v466_v52, %v354_v46  ;;  %v349_v62 = vunpack.c.l.bf16 %v196_v48  ;;  %v356_v63 = vunpack.c.l.bf16 %v200_v49  ;;  %v243_v42 = vld [vmem:[#allocation7 + $0x70] sm:$0xff] }
  0x30   :  { %v572_v0 = vmul.f32 %v460_v58, %v348_v53  ;;  %v579_v1 = vmul.f32 %v467_v59, %v355_v57  ;;  %v461_v2 = vunpack.c.l.bf16 %v260_v54  ;;  %v468_v3 = vunpack.c.l.bf16 %v264_v55  ;;  %v247_v46 = vld [vmem:[#allocation7 + $0x8c] sm:$0xff] }
  0x31   :  { %973 = vmatpush.bf16.xpose.msra.mxu0 %v662_v35  ;;  %1022 = vmatpush.bf16.xpose.msra.mxu1 %v663_v40  ;;  %v655_v7 = vpack.c.bf16 %v578_v61, %v571_v56  ;;  %v350_v8 = vunpack.c.h.bf16 %v196_v48  ;;  %v357_v9 = vunpack.c.h.bf16 %v200_v49  ;;  %v462_v10 = vunpack.c.h.bf16 %v260_v54  ;;  %v179_v40 = vld [vmem:[#allocation5 + $0x70] sm:$0xff]  ;;  %v244_v61 = vld [vmem:[#allocation7 + $0x78] sm:$0xff] }
  0x32   :  { %1071 = vmatpush.bf16.xpose.msra.mxu2 %v664_v50  ;;  %v656_v12 = vpack.c.bf16 %v579_v1, %v572_v0  ;;  %v573_v13 = vmul.f32 %v461_v2, %v349_v62  ;;  %v580_v14 = vmul.f32 %v468_v3, %v356_v63  ;;  %v469_v15 = vunpack.c.h.bf16 %v264_v55  ;;  %v180_v55 = vld [vmem:[#allocation5 + $0x78] sm:$0xff] }
  0x33   :  { %1120 = vmatpush.bf16.xpose.msra.mxu3 %v665_v60  ;;  %v574_v16 = vmul.f32 %v462_v10, %v350_v8  ;;  %v333_v17 = vunpack.c.l.bf16 %v187_v4  ;;  %v340_v18 = vunpack.c.l.bf16 %v191_v5  ;;  %v445_v19 = vunpack.c.l.bf16 %v251_v6  ;;  %v184_v56 = vld [vmem:[#allocation5 + $0x94] sm:$0xff] }
  0x34   :  { %v657_v22 = vpack.c.bf16 %v580_v14, %v573_v13  ;;  %v581_v23 = vmul.f32 %v469_v15, %v357_v9  ;;  %v452_v24 = vunpack.c.l.bf16 %v255_v11  ;;  %v334_v25 = vunpack.c.h.bf16 %v187_v4  ;;  %v248_v62 = vld [vmem:[#allocation7 + $0x94] sm:$0xff] }
  0x35   :  { %v557_v28 = vmul.f32 %v445_v19, %v333_v17  ;;  %v341_v29 = vunpack.c.h.bf16 %v191_v5  ;;  %v446_v30 = vunpack.c.h.bf16 %v251_v6  ;;  %v453_v31 = vunpack.c.h.bf16 %v255_v11  ;;  %v171_v11 = vld [vmem:[#allocation5 + $0x38] sm:$0xff] }
  0x36   :  { %v658_v32 = vpack.c.bf16 %v581_v23, %v574_v16  ;;  %v564_v33 = vmul.f32 %v452_v24, %v340_v18  ;;  %v335_v34 = vunpack.c.l.bf16 %v188_v20  ;;  %v342_v35 = vunpack.c.l.bf16 %v192_v21  ;;  %v235_v13 = vld [vmem:[#allocation7 + $0x38] sm:$0xff] }
  0x37   :  { %v558_v36 = vmul.f32 %v446_v30, %v334_v25  ;;  %v565_v37 = vmul.f32 %v453_v31, %v341_v29  ;;  %v447_v38 = vunpack.c.l.bf16 %v252_v26  ;;  %v454_v39 = vunpack.c.l.bf16 %v256_v27  ;;  %v239_v18 = vld [vmem:[#allocation7 + $0x54] sm:$0xff] }
  0x38   :  { %v336_v43 = vunpack.c.h.bf16 %v188_v20  ;;  %v343_v44 = vunpack.c.h.bf16 %v192_v21  ;;  %v448_v45 = vunpack.c.h.bf16 %v252_v26  ;;  %v648_v47 = vpack.c.bf16 %v564_v33, %v557_v28  ;;  %v176_v28 = vld [vmem:[#allocation5 + $0x5c] sm:$0xff] }
  0x39   :  { %974 = vmatpush.bf16.xpose.msra.mxu0 %v655_v7  ;;  %1023 = vmatpush.bf16.xpose.msra.mxu1 %v656_v12  ;;  %v559_v48 = vmul.f32 %v447_v38, %v335_v34  ;;  %v566_v49 = vmul.f32 %v454_v39, %v342_v35  ;;  %v455_v50 = vunpack.c.h.bf16 %v256_v27  ;;  %v649_v51 = vpack.c.bf16 %v565_v37, %v558_v36  ;;  %v175_v12 = vld [vmem:[#allocation5 + $0x54] sm:$0xff]  ;;  %v172_v27 = vld [vmem:[#allocation5 + $0x40] sm:$0xff] }
  0x3a   :  { %1072 = vmatpush.bf16.xpose.msra.mxu2 %v657_v22  ;;  %v319_v52 = vunpack.c.l.bf16 %v179_v40  ;;  %v326_v53 = vunpack.c.l.bf16 %v183_v41  ;;  %v431_v54 = vunpack.c.l.bf16 %v243_v42  ;;  %v560_v57 = vmul.f32 %v448_v45, %v336_v43  ;;  %v236_v33 = vld [vmem:[#allocation7 + $0x40] sm:$0xff] }
  0x3b   :  { %1121 = vmatpush.bf16.xpose.msra.mxu3 %v658_v32  ;;  %v567_v58 = vmul.f32 %v455_v50, %v343_v44  ;;  %v438_v59 = vunpack.c.l.bf16 %v247_v46  ;;  %v320_v60 = vunpack.c.h.bf16 %v179_v40  ;;  %v327_v0 = vunpack.c.h.bf16 %v183_v41  ;;  %v240_v34 = vld [vmem:[#allocation7 + $0x5c] sm:$0xff] }
  0x3c   :  { %v543_v63 = vmul.f32 %v431_v54, %v319_v52  ;;  %v432_v1 = vunpack.c.h.bf16 %v243_v42  ;;  %v439_v2 = vunpack.c.h.bf16 %v247_v46  ;;  %v650_v3 = vpack.c.bf16 %v566_v49, %v559_v48  ;;  %v167_v48 = vld [vmem:[#allocation5 + $0x1c] sm:$0xff] }
  0x3d   :  { %v550_v4 = vmul.f32 %v438_v59, %v326_v53  ;;  %v321_v5 = vunpack.c.l.bf16 %v180_v55  ;;  %v328_v6 = vunpack.c.l.bf16 %v184_v56  ;;  %v433_v9 = vunpack.c.l.bf16 %v244_v61  ;;  %v227_v49 = vld [vmem:[#allocation7] sm:$0xff] }
  0x3e   :  { %v544_v7 = vmul.f32 %v432_v1, %v320_v60  ;;  %v551_v8 = vmul.f32 %v439_v2, %v327_v0  ;;  %v440_v10 = vunpack.c.l.bf16 %v248_v62  ;;  %v651_v14 = vpack.c.bf16 %v567_v58, %v560_v57  ;;  %v231_v53 = vld [vmem:[#allocation7 + $0x1c] sm:$0xff] }
  0x3f   :  { %v322_v15 = vunpack.c.h.bf16 %v180_v55  ;;  %v329_v16 = vunpack.c.h.bf16 %v184_v56  ;;  %v434_v17 = vunpack.c.h.bf16 %v244_v61  ;;  %v641_v19 = vpack.c.bf16 %v550_v4, %v543_v63  ;;  %v168_v63 = vld [vmem:[#allocation5 + $0x24] sm:$0xff] }
  0x40   :  { %v545_v20 = vmul.f32 %v433_v9, %v321_v5  ;;  %v552_v21 = vmul.f32 %v440_v10, %v328_v6  ;;  %v441_v22 = vunpack.c.h.bf16 %v248_v62  ;;  %v642_v23 = vpack.c.bf16 %v551_v8, %v544_v7  ;;  %v164_v62 = vld [vmem:[#allocation5 + $0x8] sm:$0xff] }
  0x41   :  { %975 = vmatpush.bf16.xpose.msra.mxu0 %v648_v47  ;;  %1024 = vmatpush.bf16.xpose.msra.mxu1 %v649_v51  ;;  %v305_v24 = vunpack.c.l.bf16 %v171_v11  ;;  %v312_v25 = vunpack.c.l.bf16 %v175_v12  ;;  %v417_v26 = vunpack.c.l.bf16 %v235_v13  ;;  %v546_v29 = vmul.f32 %v434_v17, %v322_v15  ;;  %v163_v47 = vld [vmem:[#allocation5] sm:$0xff]  ;;  %v228_v4 = vld [vmem:[#allocation7 + $0x8] sm:$0xff] }
  0x42   :  { %1073 = vmatpush.bf16.xpose.msra.mxu2 %v650_v3  ;;  %v553_v30 = vmul.f32 %v441_v22, %v329_v16  ;;  %v424_v31 = vunpack.c.l.bf16 %v239_v18  ;;  %v306_v32 = vunpack.c.h.bf16 %v171_v11  ;;  %v313_v36 = vunpack.c.h.bf16 %v175_v12  ;;  %v232_v5 = vld [vmem:[#allocation7 + $0x24] sm:$0xff]  ;;  %v226_v22 = vld [vmem:[#allocation5 + $0x1bc] sm:$0xf] }
  0x43   :  { %1122 = vmatpush.bf16.xpose.msra.mxu3 %v651_v14  ;;  %v529_v35 = vmul.f32 %v417_v26, %v305_v24  ;;  %v418_v37 = vunpack.c.h.bf16 %v235_v13  ;;  %v425_v38 = vunpack.c.h.bf16 %v239_v18  ;;  %v643_v39 = vpack.c.bf16 %v552_v21, %v545_v20  ;;  %v222_v18 = vld [vmem:[#allocation5 + $0x1a0] sm:$0xf]  ;;  %v290_v26 = vld [vmem:[#allocation7 + $0x1bc] sm:$0xf] }
  0x44   :  { %v536_v40 = vmul.f32 %v424_v31, %v312_v25  ;;  %v307_v41 = vunpack.c.l.bf16 %v172_v27  ;;  %v314_v42 = vunpack.c.l.bf16 %v176_v28  ;;  %v419_v45 = vunpack.c.l.bf16 %v236_v33  ;;  %v286_v25 = vld [vmem:[#allocation7 + $0x1a0] sm:$0xf]  ;;  %v225_v31 = vld [vmem:[#allocation5 + $0x1b4] sm:$0xff] }
  0x45   :  { %v530_v43 = vmul.f32 %v418_v37, %v306_v32  ;;  %v537_v44 = vmul.f32 %v425_v38, %v313_v36  ;;  %v426_v46 = vunpack.c.l.bf16 %v240_v34  ;;  %v308_v50 = vunpack.c.h.bf16 %v172_v27  ;;  %v221_v27 = vld [vmem:[#allocation5 + $0x198] sm:$0xff] }
  0x46   :  { %v315_v51 = vunpack.c.h.bf16 %v176_v28  ;;  %v420_v52 = vunpack.c.h.bf16 %v236_v33  ;;  %v644_v54 = vpack.c.bf16 %v553_v30, %v546_v29  ;;  %v634_v55 = vpack.c.bf16 %v536_v40, %v529_v35  ;;  %v285_v32 = vld [vmem:[#allocation7 + $0x198] sm:$0xff] }
  0x47   :  { %v635_v56 = vpack.c.bf16 %v537_v44, %v530_v43  ;;  %v427_v57 = vunpack.c.h.bf16 %v240_v34  ;;  %v531_v58 = vmul.f32 %v419_v45, %v307_v41  ;;  %v291_v59 = vunpack.c.l.bf16 %v163_v47  ;;  %v289_v33 = vld [vmem:[#allocation7 + $0x1b4] sm:$0xff]  ;;  %v2364_v44 = vld [vmem:[#allocation2 + $0x18] sm:$0xf0]  ;;  %v2366_v45 = vld [vmem:[#allocation2 + $0x4] sm:$0xf] }
  0x48   :  { %v298_v60 = vunpack.c.l.bf16 %v167_v48  ;;  %v403_v61 = vunpack.c.l.bf16 %v227_v49  ;;  %v538_v0 = vmul.f32 %v426_v46, %v314_v42  ;;  %v532_v1 = vmul.f32 %v420_v52, %v308_v50  ;;  %v1711_v46 = vld [vmem:[#allocation2 + $0x1c] sm:$0xf0] }
  0x49   :  { %976 = vmatpush.bf16.xpose.msra.mxu0 %v641_v19  ;;  %1025 = vmatpush.bf16.xpose.msra.mxu1 %v642_v23  ;;  %v410_v2 = vunpack.c.l.bf16 %v231_v53  ;;  %v292_v3 = vunpack.c.h.bf16 %v163_v47  ;;  %v539_v6 = vmul.f32 %v427_v57, %v315_v51  ;;  %v299_v7 = vunpack.c.h.bf16 %v167_v48 }
  0x4a   :  { %1074 = vmatpush.bf16.xpose.msra.mxu2 %v643_v39  ;;  %v404_v8 = vunpack.c.h.bf16 %v227_v49  ;;  %v411_v9 = vunpack.c.h.bf16 %v231_v53  ;;  %v2350_v10 = vmul.f32 %v403_v61, %v291_v59  ;;  %v293_v12 = vunpack.c.l.bf16 %v164_v62  ;;  %v2362_v39 = vld [vmem:[#allocation2] sm:$0xf]  ;;  %v218_v59 = vld [vmem:[#allocation5 + $0x184] sm:$0xf] }
  0x4b   :  { %1123 = vmatpush.bf16.xpose.msra.mxu3 %v644_v54  ;;  %v2352_v11 = vmul.f32 %v410_v2, %v298_v60  ;;  %v300_v13 = vunpack.c.l.bf16 %v168_v63  ;;  %v405_v16 = vunpack.c.l.bf16 %v228_v4  ;;  %v412_v17 = vunpack.c.l.bf16 %v232_v5  ;;  %v214_v54 = vld [vmem:[#allocation5 + $0x168] sm:$0xf]  ;;  %v282_v61 = vld [vmem:[#allocation7 + $0x184] sm:$0xf] }
  0x4c   :  { %v2354_v14 = vmul.f32 %v404_v8, %v292_v3  ;;  %v2356_v15 = vmul.f32 %v411_v9, %v299_v7  ;;  %v636_v19 = vpack.c.bf16 %v538_v0, %v531_v58  ;;  %v294_v20 = vunpack.c.h.bf16 %v164_v62  ;;  %v278_v60 = vld [vmem:[#allocation7 + $0x168] sm:$0xf]  ;;  %v213_v2 = vld [vmem:[#allocation5 + $0x160] sm:$0xff] }
  0x4d   :  { %v406_v21 = vunpack.c.h.bf16 %v228_v4  ;;  %v301_v23 = vunpack.c.h.bf16 %v168_v63  ;;  %v413_v24 = vunpack.c.h.bf16 %v232_v5  ;;  %v637_v28 = vpack.c.bf16 %v539_v6, %v532_v1  ;;  %v217_v3 = vld [vmem:[#allocation5 + $0x17c] sm:$0xff] }
  0x4e   :  { %v627_v29 = vpack.c.bf16 %v2352_v11, %v2350_v10  ;;  %v395_v30 = vunpack.c.l.bf16 %v222_v18  ;;  %v628_v34 = vpack.c.bf16 %v2356_v15, %v2354_v14  ;;  %v517_v35 = vmul.f32 %v405_v16, %v293_v12  ;;  %v277_v4 = vld [vmem:[#allocation7 + $0x160] sm:$0xff]  ;;  %v1717_v18 = vld [vmem:[#allocation2 + $0x8] sm:$0xf] }
  0x4f   :  { %v524_v36 = vmul.f32 %v412_v17, %v300_v13  ;;  %v402_v37 = vunpack.c.l.bf16 %v226_v22  ;;  %v518_v38 = vmul.f32 %v406_v21, %v294_v20  ;;  %v507_v40 = vunpack.c.l.bf16 %v286_v25  ;;  %v281_v9 = vld [vmem:[#allocation7 + $0x17c] sm:$0xff] }
  0x50   :  { %v514_v41 = vunpack.c.l.bf16 %v290_v26  ;;  %v393_v42 = vunpack.c.l.bf16 %v221_v27  ;;  %v525_v43 = vmul.f32 %v413_v24, %v301_v23  ;;  %v400_v47 = vunpack.c.l.bf16 %v225_v31 }
  0x51   :  { %977 = vmatpush.bf16.xpose.msra.mxu0 %v634_v55  ;;  %1026 = vmatpush.bf16.xpose.msra.mxu1 %v635_v56  ;;  %v505_v48 = vunpack.c.l.bf16 %v285_v32  ;;  %v512_v49 = vunpack.c.l.bf16 %v289_v33  ;;  %v619_v50 = vmul.f32 %v507_v40, %v395_v30  ;;  %v394_v52 = vunpack.c.h.bf16 %v221_v27  ;;  %v270_v40 = vld [vmem:[#allocation7 + $0x130] sm:$0xf] }
  0x52   :  { %1075 = vmatpush.bf16.xpose.msra.mxu2 %v636_v19  ;;  %v626_v51 = vmul.f32 %v514_v41, %v402_v37  ;;  %v401_v53 = vunpack.c.h.bf16 %v225_v31  ;;  %v506_v57 = vunpack.c.h.bf16 %v285_v32  ;;  %v513_v58 = vunpack.c.h.bf16 %v289_v33  ;;  %v1935_v19 = vld [vmem:[#allocation2 + $0x20] sm:$0xf0]  ;;  %v274_v41 = vld [vmem:[#allocation7 + $0x14c] sm:$0xf] }
  0x53   :  { %1124 = vmatpush.bf16.xpose.msra.mxu3 %v637_v28  ;;  %v617_v55 = vmul.f32 %v505_v48, %v393_v42  ;;  %v624_v56 = vmul.f32 %v512_v49, %v400_v47  ;;  %v629_v62 = vpack.c.bf16 %v524_v36, %v517_v35  ;;  %v1710_v63 = vor.u32 %v2364_v44, %v2362_v39  ;;  %v1932_v28 = vld [vmem:[#allocation2 + $0xc] sm:$0xf]  ;;  %v209_v47 = vld [vmem:[#allocation5 + $0x144] sm:$0xff] }
  0x54   :  { %v1714_v0 = vor.u32 %v2366_v45, %v1711_v46  ;;  %v682_v1 = vpack.c.bf16 %v626_v51, %v619_v50  ;;  %v618_v6 = vmul.f32 %v506_v57, %v394_v52  ;;  %v625_v7 = vmul.f32 %v513_v58, %v401_v53  ;;  %v210_v39 = vld [vmem:[#allocation5 + $0x14c] sm:$0xf]  ;;  %v273_v50 = vld [vmem:[#allocation7 + $0x144] sm:$0xff] }
  0x55   :  { %v680_v5 = vpack.c.bf16 %v624_v56, %v617_v55  ;;  %v381_v8 = vunpack.c.l.bf16 %v214_v54  ;;  %v630_v10 = vpack.c.bf16 %v525_v43, %v518_v38  ;;  %v388_v11 = vunpack.c.l.bf16 %v218_v59  ;;  %v206_v38 = vld [vmem:[#allocation5 + $0x130] sm:$0xf]  ;;  %v205_v46 = vld [vmem:[#allocation5 + $0x128] sm:$0xff] }
  0x56   :  { %v493_v12 = vunpack.c.l.bf16 %v278_v60  ;;  %v500_v13 = vunpack.c.l.bf16 %v282_v61  ;;  %v681_v14 = vpack.c.bf16 %v625_v7, %v618_v6  ;;  %v379_v15 = vunpack.c.l.bf16 %v213_v2  ;;  %v269_v48 = vld [vmem:[#allocation7 + $0x128] sm:$0xff]  ;;  %v1737_v61 = vld [vmem:[#allocation2 + $0x38] sm:$0xf]  ;;  %v1745_v6 = vld [vmem:[#allocation2 + $0x40] sm:$0xf] }
  0x57   :  { %v386_v16 = vunpack.c.l.bf16 %v217_v3  ;;  %v491_v17 = vunpack.c.l.bf16 %v277_v4  ;;  %v498_v22 = vunpack.c.l.bf16 %v281_v9  ;;  %v380_v23 = vunpack.c.h.bf16 %v213_v2  ;;  %v1739_v2 = vld [vmem:[#allocation2 + $0x54] sm:$0xf0]  ;;  %v1942_v7 = vld [vmem:[#allocation2 + $0x58] sm:$0xf0] }
  0x58   :  { %v605_v20 = vmul.f32 %v493_v12, %v381_v8  ;;  %v612_v21 = vmul.f32 %v500_v13, %v388_v11  ;;  %v387_v25 = vunpack.c.h.bf16 %v217_v3  ;;  %v492_v26 = vunpack.c.h.bf16 %v277_v4  ;;  %v1939_v11 = vld [vmem:[#allocation2 + $0x44] sm:$0xf]  ;;  %v1747_v12 = vld [vmem:[#allocation2 + $0x5c] sm:$0xf0] }
  0x59   :  { %978 = vmatpush.bf16.xpose.msra.mxu0 %v627_v29  ;;  %1027 = vmatpush.bf16.xpose.msra.mxu1 %v628_v34  ;;  %v603_v24 = vmul.f32 %v491_v17, %v379_v15  ;;  %v499_v27 = vunpack.c.h.bf16 %v281_v9  ;;  %v1719_v29 = vld [vmem:[#allocation2 + $0x24] sm:$0xf0]  ;;  %v610_v30 = vmul.f32 %v498_v22, %v386_v16  ;;  %v1718_v31 = vor.u32 %v1935_v19, %v1717_v18  ;;  %v198_v15 = vld [vmem:[#allocation5 + $0xf8] sm:$0xf]  ;;  %v202_v16 = vld [vmem:[#allocation5 + $0x114] sm:$0xf] }
  0x5a   :  { %1076 = vmatpush.bf16.xpose.msra.mxu2 %v629_v62  ;;  %v604_v32 = vmul.f32 %v492_v26, %v380_v23  ;;  %v1722_v35 = vor.u32 %v1932_v28, %v1719_v29  ;;  %v675_v36 = vpack.c.bf16 %v612_v21, %v605_v20  ;;  %v367_v42 = vunpack.c.l.bf16 %v206_v38  ;;  %v262_v17 = vld [vmem:[#allocation7 + $0xf8] sm:$0xf]  ;;  %v266_v18 = vld [vmem:[#allocation7 + $0x114] sm:$0xf]  ;;  %v1765_v38 = vld [vmem:[#allocation2 + $0x70] sm:$0xf] }
  0x5b   :  { %1125 = vmatpush.bf16.xpose.msra.mxu3 %v630_v10  ;;  %v611_v33 = vmul.f32 %v499_v27, %v387_v25  ;;  %v673_v34 = vpack.c.bf16 %v610_v30, %v603_v24  ;;  %v374_v43 = vunpack.c.l.bf16 %v210_v39  ;;  %v479_v44 = vunpack.c.l.bf16 %v270_v40  ;;  %v197_v23 = vld [vmem:[#allocation5 + $0xf0] sm:$0xff] }
  0x5c   :  { %v486_v45 = vunpack.c.l.bf16 %v274_v41  ;;  %v365_v51 = vunpack.c.l.bf16 %v205_v46  ;;  %v372_v52 = vunpack.c.l.bf16 %v209_v47  ;;  %v477_v53 = vunpack.c.l.bf16 %v269_v48  ;;  %v201_v24 = vld [vmem:[#allocation5 + $0x10c] sm:$0xff] }
  0x5d   :  { %v674_v37 = vpack.c.bf16 %v611_v33, %v604_v32  ;;  %v591_v49 = vmul.f32 %v479_v44, %v367_v42  ;;  %v484_v55 = vunpack.c.l.bf16 %v273_v50  ;;  %v366_v56 = vunpack.c.h.bf16 %v205_v46  ;;  %v261_v25 = vld [vmem:[#allocation7 + $0xf0] sm:$0xff]  ;;  %v1948_v41 = vld [vmem:[#allocation2 + $0x88] sm:$0xf0] }
  0x5e   :  { %v598_v54 = vmul.f32 %v486_v45, %v374_v43  ;;  %v373_v57 = vunpack.c.h.bf16 %v209_v47  ;;  %v589_v58 = vmul.f32 %v477_v53, %v365_v51  ;;  %v478_v59 = vunpack.c.h.bf16 %v269_v48  ;;  %v265_v27 = vld [vmem:[#allocation7 + $0x10c] sm:$0xff]  ;;  %v1945_v42 = vld [vmem:[#allocation2 + $0x74] sm:$0xf]  ;;  %v1773_v47 = vld [vmem:[#allocation2 + $0x78] sm:$0xf] }
  0x5f   :  { %v485_v60 = vunpack.c.h.bf16 %v273_v50  ;;  %v1746_v13 = vor.u32 %v1942_v7, %v1745_v6  ;;  %v353_v19 = vunpack.c.l.bf16 %v198_v15  ;;  %v360_v20 = vunpack.c.l.bf16 %v202_v16  ;;  %v1767_v43 = vld [vmem:[#allocation2 + $0x8c] sm:$0xf0]  ;;  %v1949_v48 = vld [vmem:[#allocation2 + $0x90] sm:$0xf0]  ;;  %v1775_v53 = vld [vmem:[#allocation2 + $0x94] sm:$0xf0] }
  0x60   :  { %979 = vmatmul.bf16.vlgmr.msra.gmra.mxu0 %v1710_v63  ;;  %1028 = vmatmul.bf16.vlgmr.msra.gmra.mxu1 %v1714_v0  ;;  %v668_v62 = vpack.c.bf16 %v598_v54, %v591_v49  ;;  %v596_v63 = vmul.f32 %v484_v55, %v372_v52  ;;  %v1941_v0 = vld [vmem:[#allocation2 + $0x50] sm:$0xf0]  ;;  %v590_v3 = vmul.f32 %v478_v59, %v366_v56  ;;  %v465_v21 = vunpack.c.l.bf16 %v262_v17  ;;  %v1946_v52 = vld [vmem:[#allocation2 + $0x7c] sm:$0xf]  ;;  %v190_v56 = vld [vmem:[#allocation5 + $0xc0] sm:$0xf] }
  0x61   :  { %1167 = vmatpush.bf16.xpose.msrb.mxu0 %v680_v5  ;;  %1216 = vmatpush.bf16.xpose.msrb.mxu1 %v681_v14  ;;  %v597_v4 = vmul.f32 %v485_v60, %v373_v57  ;;  %v1738_v9 = vor.u32 %v1941_v0, %v1737_v61  ;;  %v1750_v14 = vor.u32 %v1939_v11, %v1747_v12  ;;  %v472_v22 = vunpack.c.l.bf16 %v266_v18  ;;  %v194_v57 = vld [vmem:[#allocation5 + $0xdc] sm:$0xf]  ;;  %v1793_v15 = vld [vmem:[#allocation2 + $0xa8] sm:$0xf]  ;;  %v1955_v18 = vld [vmem:[#allocation2 + $0xc0] sm:$0xf0] }
  0x62   :  { %1265 = vmatpush.bf16.xpose.msrb.mxu2 %v682_v1  ;;  %1126 = vmatmul.bf16.vlgmr.msra.gmra.mxu3 %v1722_v35  ;;  %v1938_v1 = vld [vmem:[#allocation2 + $0x3c] sm:$0xf]  ;;  %v666_v5 = vpack.c.bf16 %v596_v63, %v589_v58  ;;  %v577_v26 = vmul.f32 %v465_v21, %v353_v19  ;;  %v351_v28 = vunpack.c.l.bf16 %v197_v23  ;;  %v358_v29 = vunpack.c.l.bf16 %v201_v24  ;;  %v254_v58 = vld [vmem:[#allocation7 + $0xc0] sm:$0xf]  ;;  %v1952_v19 = vld [vmem:[#allocation2 + $0xac] sm:$0xf] }
  0x63   :  { %1077 = vmatmul.bf16.vlgmr.msra.gmra.mxu2 %v1718_v31  ;;  %v667_v8 = vpack.c.bf16 %v597_v4, %v590_v3  ;;  %v1742_v10 = vor.u32 %v1938_v1, %v1739_v2  ;;  %v463_v30 = vunpack.c.l.bf16 %v261_v25  ;;  %v584_v31 = vmul.f32 %v472_v22, %v360_v20  ;;  %v258_v59 = vld [vmem:[#allocation7 + $0xdc] sm:$0xf]  ;;  %v193_v1 = vld [vmem:[#allocation5 + $0xd4] sm:$0xff]  ;;  %v1795_v20 = vld [vmem:[#allocation2 + $0xc4] sm:$0xf0] }
  0x64   :  { %v470_v32 = vunpack.c.l.bf16 %v265_v27  ;;  %v352_v33 = vunpack.c.h.bf16 %v197_v23  ;;  %v1766_v50 = vor.u32 %v1948_v41, %v1765_v38  ;;  %v1770_v51 = vor.u32 %v1945_v42, %v1767_v43  ;;  %v189_v0 = vld [vmem:[#allocation5 + $0xb8] sm:$0xff]  ;;  %v181_v41 = vld [vmem:[#allocation5 + $0x80] sm:$0xff] }
  0x65   :  { %v575_v35 = vmul.f32 %v463_v30, %v351_v28  ;;  %v661_v39 = vpack.c.bf16 %v584_v31, %v577_v26  ;;  %v1774_v54 = vor.u32 %v1949_v48, %v1773_v47  ;;  %v1778_v55 = vor.u32 %v1946_v52, %v1775_v53  ;;  %v253_v2 = vld [vmem:[#allocation7 + $0xb8] sm:$0xff]  ;;  %v1803_v30 = vld [vmem:[#allocation2 + $0xcc] sm:$0xf0]  ;;  %v245_v43 = vld [vmem:[#allocation7 + $0x80] sm:$0xff] }
  0x66   :  { %v582_v40 = vmul.f32 %v470_v32, %v358_v29  ;;  %v339_v60 = vunpack.c.l.bf16 %v190_v56  ;;  %v346_v61 = vunpack.c.l.bf16 %v194_v57  ;;  %v458_v63 = vunpack.c.l.bf16 %v258_v59  ;;  %v257_v4 = vld [vmem:[#allocation7 + $0xd4] sm:$0xff]  ;;  %v185_v42 = vld [vmem:[#allocation5 + $0x9c] sm:$0xff] }
  0x67   :  { %v344_v6 = vunpack.c.l.bf16 %v193_v1  ;;  %v449_v7 = vunpack.c.l.bf16 %v253_v2  ;;  %v345_v11 = vunpack.c.h.bf16 %v193_v1  ;;  %v1798_v28 = vor.u32 %v1952_v19, %v1795_v20  ;;  %v1953_v29 = vld [vmem:[#allocation2 + $0xb4] sm:$0xf]  ;;  %v1821_v56 = vld [vmem:[#allocation2 + $0xe0] sm:$0xf]  ;;  %v1962_v59 = vld [vmem:[#allocation2 + $0xf8] sm:$0xf0] }
  0x68   :  { %v659_v46 = vpack.c.bf16 %v582_v40, %v575_v35  ;;  %v1806_v32 = vor.u32 %v1953_v29, %v1803_v30  ;;  %v246_v35 = vld [vmem:[#allocation7 + $0x88] sm:$0xf]  ;;  %v330_v47 = vunpack.c.l.bf16 %v185_v42  ;;  %v435_v48 = vunpack.c.l.bf16 %v245_v43 }
  0x69   :  { %1168 = vmatpush.bf16.xpose.msrb.mxu0 %v673_v34  ;;  %1217 = vmatpush.bf16.xpose.msrb.mxu1 %v674_v37  ;;  %v359_v34 = vunpack.c.h.bf16 %v201_v24  ;;  %v471_v37 = vunpack.c.h.bf16 %v265_v27  ;;  %v1801_v24 = vld [vmem:[#allocation2 + $0xb0] sm:$0xf]  ;;  %v1794_v27 = vor.u32 %v1955_v18, %v1793_v15  ;;  %v331_v52 = vunpack.c.h.bf16 %v185_v42  ;;  %v1829_v1 = vld [vmem:[#allocation2 + $0xe8] sm:$0xf]  ;;  %v1857_v42 = vld [vmem:[#allocation2 + $0x120] sm:$0xf] }
  0x6a   :  { %1266 = vmatpush.bf16.xpose.msrb.mxu2 %v675_v36  ;;  %v464_v36 = vunpack.c.h.bf16 %v261_v25  ;;  %v1956_v25 = vld [vmem:[#allocation2 + $0xc8] sm:$0xf0]  ;;  %v177_v19 = vld [vmem:[#allocation5 + $0x64] sm:$0xff] }
  0x6b   :  { %v583_v45 = vmul.f32 %v471_v37, %v359_v34  ;;  %v1802_v31 = vor.u32 %v1956_v25, %v1801_v24  ;;  %v186_v34 = vld [vmem:[#allocation5 + $0xa4] sm:$0xf]  ;;  %v173_v18 = vld [vmem:[#allocation5 + $0x48] sm:$0xff]  ;;  %v316_v24 = vunpack.c.l.bf16 %v177_v19  ;;  %v317_v29 = vunpack.c.h.bf16 %v177_v19  ;;  %v1885_v19 = vld [vmem:[#allocation2 + $0x158] sm:$0xf] }
  0x6c   :  { %v576_v44 = vmul.f32 %v464_v36, %v352_v33  ;;  %v182_v33 = vld [vmem:[#allocation5 + $0x88] sm:$0xf]  ;;  %v250_v36 = vld [vmem:[#allocation7 + $0xa4] sm:$0xf]  ;;  %v332_v38 = vunpack.c.l.bf16 %v186_v34 }
  0x6d   :  { %v325_v37 = vunpack.c.l.bf16 %v182_v33  ;;  %v444_v40 = vunpack.c.l.bf16 %v250_v36  ;;  %v237_v20 = vld [vmem:[#allocation7 + $0x48] sm:$0xff]  ;;  %v1849_v33 = vld [vmem:[#allocation2 + $0x118] sm:$0xf]  ;;  %v1969_v36 = vld [vmem:[#allocation2 + $0x130] sm:$0xf0] }
  0x6e   :  { %v660_v49 = vpack.c.bf16 %v583_v45, %v576_v44  ;;  %v249_v45 = vld [vmem:[#allocation7 + $0x9c] sm:$0xff]  ;;  %v421_v25 = vunpack.c.l.bf16 %v237_v20 }
  0x70   :  { %984 = vmatmul.bf16.gmra.mxu0 %v1738_v9  ;;  %1033 = vmatmul.bf16.gmra.mxu1 %v1742_v10  ;;  %v456_v9 = vunpack.c.l.bf16 %v257_v4  ;;  %v338_v10 = vunpack.c.h.bf16 %v189_v0 }
  0x71   :  { %1169 = vmatpush.bf16.xpose.msrb.mxu0 %v666_v5  ;;  %1218 = vmatpush.bf16.xpose.msrb.mxu1 %v667_v8  ;;  %v337_v5 = vunpack.c.l.bf16 %v189_v0  ;;  %v570_v8 = vmul.f32 %v458_v63, %v346_v61  ;;  %v1823_v61 = vld [vmem:[#allocation2 + $0xfc] sm:$0xf0] }
  0x72   :  { %1267 = vmatpush.bf16.xpose.msrb.mxu2 %v668_v62  ;;  %1131 = vmatmul.bf16.gmra.mxu3 %v1750_v14  ;;  %v451_v62 = vunpack.c.l.bf16 %v254_v58  ;;  %v457_v14 = vunpack.c.h.bf16 %v257_v4  ;;  %v568_v17 = vmul.f32 %v456_v9, %v344_v6  ;;  %v1822_v4 = vor.u32 %v1962_v59, %v1821_v56  ;;  %v1960_v6 = vld [vmem:[#allocation2 + $0xec] sm:$0xf]  ;;  %v165_v59 = vld [vmem:[#allocation5 + $0x10] sm:$0xff] }
  0x73   :  { %1082 = vmatmul.bf16.gmra.mxu2 %v1746_v13  ;;  %v561_v12 = vmul.f32 %v449_v7, %v337_v5  ;;  %v450_v13 = vunpack.c.h.bf16 %v253_v2  ;;  %v1963_v2 = vld [vmem:[#allocation2 + $0x100] sm:$0xf0]  ;;  %v1831_v7 = vld [vmem:[#allocation2 + $0x104] sm:$0xf0] }
  0x74   :  { %v563_v3 = vmul.f32 %v451_v62, %v339_v60  ;;  %v569_v22 = vmul.f32 %v457_v14, %v345_v11  ;;  %v1959_v60 = vld [vmem:[#allocation2 + $0xe4] sm:$0xf]  ;;  %v1834_v9 = vor.u32 %v1960_v6, %v1831_v7  ;;  %v178_v11 = vld [vmem:[#allocation5 + $0x6c] sm:$0xf] }
  0x75   :  { %v562_v21 = vmul.f32 %v450_v13, %v338_v10  ;;  %v652_v23 = vpack.c.bf16 %v568_v17, %v561_v12  ;;  %v1826_v5 = vor.u32 %v1959_v60, %v1823_v61  ;;  %v174_v10 = vld [vmem:[#allocation5 + $0x50] sm:$0xf]  ;;  %v242_v13 = vld [vmem:[#allocation7 + $0x6c] sm:$0xf]  ;;  %v318_v15 = vunpack.c.l.bf16 %v178_v11 }
  0x76   :  { %v654_v16 = vpack.c.bf16 %v570_v8, %v563_v3  ;;  %v1830_v8 = vor.u32 %v1963_v2, %v1829_v1  ;;  %v238_v12 = vld [vmem:[#allocation7 + $0x50] sm:$0xf]  ;;  %v311_v14 = vunpack.c.l.bf16 %v174_v10  ;;  %v430_v17 = vunpack.c.l.bf16 %v242_v13  ;;  %v1976_v13 = vld [vmem:[#allocation2 + $0x168] sm:$0xf0] }
  0x77   :  { %v653_v26 = vpack.c.bf16 %v569_v22, %v562_v21  ;;  %v241_v22 = vld [vmem:[#allocation7 + $0x64] sm:$0xff]  ;;  %v169_v60 = vld [vmem:[#allocation5 + $0x2c] sm:$0xff] }
  0x78   :  { %v229_v61 = vld [vmem:[#allocation7 + $0x10] sm:$0xff]  ;;  %v302_v1 = vunpack.c.l.bf16 %v169_v60  ;;  %v303_v6 = vunpack.c.h.bf16 %v169_v60 }
  0x79   :  { %1170 = vmatpush.bf16.xpose.msrb.mxu0 %v659_v46  ;;  %1219 = vmatpush.bf16.xpose.msrb.mxu1 %v660_v49  ;;  %v323_v46 = vunpack.c.l.bf16 %v181_v41  ;;  %v556_v49 = vmul.f32 %v444_v40, %v332_v38  ;;  %v1851_v38 = vld [vmem:[#allocation2 + $0x134] sm:$0xf0]  ;;  %v407_v2 = vunpack.c.l.bf16 %v229_v61  ;;  %v1877_v10 = vld [vmem:[#allocation2 + $0x150] sm:$0xf] }
  0x7a   :  { %1268 = vmatpush.bf16.xpose.msrb.mxu2 %v661_v39  ;;  %v437_v39 = vunpack.c.l.bf16 %v246_v35 }
  0x7b   :  { %v547_v53 = vmul.f32 %v435_v48, %v323_v46  ;;  %v1859_v48 = vld [vmem:[#allocation2 + $0x13c] sm:$0xf0] }
  0x7c   :  { %v549_v44 = vmul.f32 %v437_v39, %v325_v37  ;;  %v1966_v37 = vld [vmem:[#allocation2 + $0x11c] sm:$0xf] }
  0x7d   :  { %v1854_v46 = vor.u32 %v1966_v37, %v1851_v38  ;;  %v1915_v37 = vld [vmem:[#allocation2 + $0x1ac] sm:$0xf0] }
  0x7e   :  { %v647_v57 = vpack.c.bf16 %v556_v49, %v549_v44 }
  0x80   :  { %989 = vmatmul.bf16.gmra.mxu0 %v1766_v50  ;;  %1038 = vmatmul.bf16.gmra.mxu1 %v1770_v51  ;;  %v442_v50 = vunpack.c.l.bf16 %v249_v45  ;;  %v324_v51 = vunpack.c.h.bf16 %v181_v41 }
  0x81   :  { %1171 = vmatpush.bf16.xpose.msrb.mxu0 %v652_v23  ;;  %1220 = vmatpush.bf16.xpose.msrb.mxu1 %v653_v26  ;;  %v309_v23 = vunpack.c.l.bf16 %v173_v18  ;;  %v542_v26 = vmul.f32 %v430_v17, %v318_v15  ;;  %v1879_v15 = vld [vmem:[#allocation2 + $0x16c] sm:$0xf0] }
  0x82   :  { %1136 = vmatmul.bf16.gmra.mxu3 %v1778_v55  ;;  %1269 = vmatpush.bf16.xpose.msrb.mxu2 %v654_v16  ;;  %v443_v55 = vunpack.c.h.bf16 %v249_v45  ;;  %v554_v58 = vmul.f32 %v442_v50, %v330_v47  ;;  %v423_v16 = vunpack.c.l.bf16 %v238_v12  ;;  %v1850_v45 = vor.u32 %v1969_v36, %v1849_v33  ;;  %v1967_v47 = vld [vmem:[#allocation2 + $0x124] sm:$0xf]  ;;  %v1984_v33 = vld [vmem:[#allocation2 + $0x1a8] sm:$0xf0]  ;;  %v1981_v36 = vld [vmem:[#allocation2 + $0x194] sm:$0xf] }
  0x83   :  { %1087 = vmatmul.bf16.gmra.mxu2 %v1774_v54  ;;  %v436_v54 = vunpack.c.h.bf16 %v245_v43  ;;  %v533_v30 = vmul.f32 %v421_v25, %v309_v23  ;;  %v1970_v43 = vld [vmem:[#allocation2 + $0x138] sm:$0xf0]  ;;  %v1862_v50 = vor.u32 %v1967_v47, %v1859_v48  ;;  %v1887_v25 = vld [vmem:[#allocation2 + $0x174] sm:$0xf0] }
  0x84   :  { %v555_v63 = vmul.f32 %v443_v55, %v331_v52  ;;  %v645_v0 = vpack.c.bf16 %v554_v58, %v547_v53  ;;  %v535_v21 = vmul.f32 %v423_v16, %v311_v14  ;;  %v1858_v49 = vor.u32 %v1970_v43, %v1857_v42  ;;  %v170_v52 = vld [vmem:[#allocation5 + $0x34] sm:$0xf]  ;;  %v230_v53 = vld [vmem:[#allocation7 + $0x18] sm:$0xf] }
  0x85   :  { %v548_v62 = vmul.f32 %v436_v54, %v324_v51  ;;  %v166_v51 = vld [vmem:[#allocation5 + $0x18] sm:$0xf]  ;;  %v234_v54 = vld [vmem:[#allocation7 + $0x34] sm:$0xf]  ;;  %v304_v56 = vunpack.c.l.bf16 %v170_v52  ;;  %v1727_v52 = vld [vmem:[#allocation2 + $0x2c] sm:$0xf0] }
  0x86   :  { %v640_v34 = vpack.c.bf16 %v542_v26, %v535_v21  ;;  %v297_v55 = vunpack.c.l.bf16 %v166_v51  ;;  %v416_v58 = vunpack.c.l.bf16 %v234_v54  ;;  %v1973_v14 = vld [vmem:[#allocation2 + $0x154] sm:$0xf] }
  0x87   :  { %v646_v3 = vpack.c.bf16 %v555_v63, %v548_v62  ;;  %v233_v63 = vld [vmem:[#allocation7 + $0x2c] sm:$0xff]  ;;  %v1882_v23 = vor.u32 %v1973_v14, %v1879_v15  ;;  %v1933_v51 = vld [vmem:[#allocation2 + $0x14] sm:$0xf]  ;;  %v1755_v14 = vld [vmem:[#allocation2 + $0x64] sm:$0xf0] }
  0x88   :  { %v1937_v54 = vld [vmem:[#allocation2 + $0x30] sm:$0xf0]  ;;  %v1761_v15 = vld [vmem:[#allocation2 + $0x50] sm:$0xf] }
  0x89   :  { %1172 = vmatpush.bf16.xpose.msrb.mxu0 %v645_v0  ;;  %1221 = vmatpush.bf16.xpose.msrb.mxu1 %v646_v3  ;;  %v295_v0 = vunpack.c.l.bf16 %v165_v59  ;;  %v528_v3 = vmul.f32 %v416_v58, %v304_v56  ;;  %v1730_v56 = vor.u32 %v1933_v51, %v1727_v52 }
  0x8a   :  { %1270 = vmatpush.bf16.xpose.msrb.mxu2 %v647_v57  ;;  %v409_v57 = vunpack.c.l.bf16 %v230_v53  ;;  %v1733_v53 = vld [vmem:[#allocation2 + $0x18] sm:$0xf] }
  0x8b   :  { %v519_v7 = vmul.f32 %v407_v2, %v295_v0  ;;  %v1734_v60 = vor.u32 %v1937_v54, %v1733_v53  ;;  %v2054_v53 = vld [vmem:[#allocation8 + $0x20] sm:$0xff]  }
  0x8c   :  { %v521_v62 = vmul.f32 %v409_v57, %v297_v55  ;;  %v2061_v54 = vld [vmem:[#allocation10 + $0x20] sm:$0xff]  }
  0x8e   :  { %v633_v11 = vpack.c.bf16 %v528_v3, %v521_v62  ;;  %v2063_v62 = vld [vmem:[#allocation10 + $0x30] sm:$0xff]  }
  0x8f   :  { %v2046_v2 = vunpack.c.h.bf16 %v2063_v62 }
  0x90   :  { %994 = vmatmul.bf16.gmra.mxu0 %v1794_v27  ;;  %1043 = vmatmul.bf16.gmra.mxu1 %v1798_v28  ;;  %v428_v27 = vunpack.c.l.bf16 %v241_v22  ;;  %v310_v28 = vunpack.c.h.bf16 %v173_v18 }
  0x92   :  { %1141 = vmatmul.bf16.gmra.mxu3 %v1806_v32  ;;  %v429_v32 = vunpack.c.h.bf16 %v241_v22  ;;  %v540_v35 = vmul.f32 %v428_v27, %v316_v24  ;;  %1271 = vmatpush.bf16.xpose.msrb.mxu2 %v640_v34  ;;  %v1878_v22 = vor.u32 %v1976_v13, %v1877_v10  ;;  %v1974_v24 = vld [vmem:[#allocation2 + $0x15c] sm:$0xf]  ;;  %v1940_v13 = vld [vmem:[#allocation2 + $0x4c] sm:$0xf] }
  0x93   :  { %1092 = vmatmul.bf16.gmra.mxu2 %v1802_v31  ;;  %v422_v31 = vunpack.c.h.bf16 %v237_v20  ;;  %v1977_v20 = vld [vmem:[#allocation2 + $0x170] sm:$0xf0]  ;;  %v1890_v27 = vor.u32 %v1974_v24, %v1887_v25  ;;  %v2055_v25 = vld [vmem:[#allocation8 + $0x28] sm:$0xff]  }
  0x94   :  { %v541_v40 = vmul.f32 %v429_v32, %v317_v29  ;;  %v638_v41 = vpack.c.bf16 %v540_v35, %v533_v30  ;;  %v1886_v26 = vor.u32 %v1977_v20, %v1885_v19  ;;  %v1983_v29 = vld [vmem:[#allocation2 + $0x1a0] sm:$0xf0]  ;;  %v1980_v30 = vld [vmem:[#allocation2 + $0x18c] sm:$0xf]  ;;  %v1913_v32 = vld [vmem:[#allocation2 + $0x190] sm:$0xf] }
  0x95   :  { %v534_v39 = vmul.f32 %v422_v31, %v310_v28  ;;  %v1905_v28 = vld [vmem:[#allocation2 + $0x188] sm:$0xf]  ;;  %v1914_v38 = vor.u32 %v1984_v33, %v1913_v32 }
  0x96   :  { %1173 = vmatpush.bf16.xpose.msrb.mxu0 %v638_v41  ;;  %v1907_v31 = vld [vmem:[#allocation2 + $0x1a4] sm:$0xf0]  ;;  %v1906_v34 = vor.u32 %v1983_v29, %v1905_v28  ;;  %v2064_v41 = vld [vmem:[#allocation10 + $0x38] sm:$0xff]   ;;  %v2010_v28 = vunpack.c.h.bf16 %v2055_v25 }
  0x97   :  { %v639_v44 = vpack.c.bf16 %v541_v40, %v534_v39  ;;  %v1910_v35 = vor.u32 %v1980_v30, %v1907_v31  ;;  %v1918_v39 = vor.u32 %v1981_v36, %v1915_v37  ;;  %v2057_v40 = vld [vmem:[#allocation8 + $0x38] sm:$0xff]  }
  0x98   :  { %v2017_v42 = vunpack.c.l.bf16 %v2057_v40  ;;  %v2018_v43 = vunpack.c.h.bf16 %v2057_v40  ;;  %v1950_v40 = vld [vmem:[#allocation2 + $0x98] sm:$0xf0] }
  0x99   :  { %1222 = vmatpush.bf16.xpose.msrb.mxu1 %v639_v44  ;;  %v2049_v44 = vunpack.c.l.bf16 %v2064_v41 }
  0x9a   :  { %1272 = vmatpush.bf16.xpose.msrb.mxu2 %v633_v11  ;;  %v1753_v11 = vld [vmem:[#allocation2 + $0x48] sm:$0xf] }
  0xa0   :  { %999 = vmatmul.bf16.gmra.mxu0 %v1822_v4  ;;  %1048 = vmatmul.bf16.gmra.mxu1 %v1826_v5  ;;  %v414_v4 = vunpack.c.l.bf16 %v233_v63  ;;  %v296_v5 = vunpack.c.h.bf16 %v165_v59 }
  0xa2   :  { %1146 = vmatmul.bf16.gmra.mxu3 %v1834_v9  ;;  %v415_v9 = vunpack.c.h.bf16 %v233_v63  ;;  %v526_v12 = vmul.f32 %v414_v4, %v302_v1  ;;  %v2045_v1 = vunpack.c.l.bf16 %v2063_v62 }
  0xa3   :  { %1097 = vmatmul.bf16.gmra.mxu2 %v1830_v8  ;;  %v408_v8 = vunpack.c.h.bf16 %v229_v61  ;;  %v2056_v61 = vld [vmem:[#allocation8 + $0x30] sm:$0xff]  }
  0xa4   :  { %v527_v17 = vmul.f32 %v415_v9, %v303_v6  ;;  %v631_v18 = vpack.c.bf16 %v526_v12, %v519_v7  ;;  %v2013_v63 = vunpack.c.l.bf16 %v2056_v61  ;;  %v2014_v0 = vunpack.c.h.bf16 %v2056_v61  ;;  %v1943_v12 = vld [vmem:[#allocation2 + $0x60] sm:$0xf0] }
  0xa5   :  { %v520_v16 = vmul.f32 %v408_v8, %v296_v5 }
  0xa6   :  { %1174 = vmatpush.bf16.xpose.msrb.mxu0 %v631_v18  ;;  %v1406_v5 = vmul.f32 %v2045_v1, %v2013_v63  ;;  %v1407_v6 = vmul.f32 %v2046_v2, %v2014_v0  ;;  %v1758_v18 = vor.u32 %v1940_v13, %v1755_v14 }
  0xa7   :  { %v632_v21 = vpack.c.bf16 %v527_v17, %v520_v16  ;;  %v1944_v16 = vld [vmem:[#allocation2 + $0x68] sm:$0xf0]  ;;  %v1754_v17 = vor.u32 %v1943_v12, %v1753_v11 }
  0xa8   :  { %v1416_v10 = vpack.c.bf16 %v1407_v6, %v1406_v5  ;;  %v1954_v5 = vld [vmem:[#allocation2 + $0xbc] sm:$0xf]  ;;  %v1811_v6 = vld [vmem:[#allocation2 + $0xd4] sm:$0xf0] }
  0xa9   :  { %1223 = vmatpush.bf16.xpose.msrb.mxu1 %v632_v21  ;;  %v1814_v11 = vor.u32 %v1954_v5, %v1811_v6  ;;  %v1972_v5 = vld [vmem:[#allocation2 + $0x148] sm:$0xf0] }
  0xb0   :  { %1004 = vmatmul.bf16.gmra.mxu0 %v1850_v45  ;;  %1053 = vmatmul.bf16.gmra.mxu1 %v1854_v46  ;;  %v2050_v45 = vunpack.c.h.bf16 %v2064_v41  ;;  %v1408_v46 = vmul.f32 %v2049_v44, %v2017_v42  ;;  %v1947_v41 = vld [vmem:[#allocation2 + $0x84] sm:$0xf]  ;;  %v1783_v42 = vld [vmem:[#allocation2 + $0x9c] sm:$0xf0] }
  0xb1   :  { %v1951_v44 = vld [vmem:[#allocation2 + $0xa0] sm:$0xf0] }
  0xb2   :  { %1151 = vmatmul.bf16.gmra.mxu3 %v1862_v50  ;;  %v1409_v47 = vmul.f32 %v2050_v45, %v2018_v43  ;;  %v1936_v50 = vld [vmem:[#allocation2 + $0x28] sm:$0xf0]  ;;  %v1789_v43 = vld [vmem:[#allocation2 + $0x88] sm:$0xf] }
  0xb3   :  { %1102 = vmatmul.bf16.gmra.mxu2 %v1858_v49  ;;  %v1725_v49 = vld [vmem:[#allocation2 + $0x10] sm:$0xf]  ;;  %v1790_v51 = vor.u32 %v1951_v44, %v1789_v43 }
  0xb4   :  { %v1417_v48 = vpack.c.bf16 %v1409_v47, %v1408_v46  ;;  %v1726_v55 = vor.u32 %v1936_v50, %v1725_v49  ;;  %v1786_v46 = vor.u32 %v1947_v41, %v1783_v42 }
  0xb6   :  { %1426 = vmatpush.bf16.xpose.msrb.mxu3 %v1417_v48 }
  0xbe   :  { %1427 = vmatpush.bf16.xpose.msrb.mxu3 %v1416_v10 }
  0xc0   :  { %1009 = vmatmul.bf16.gmra.mxu0 %v1878_v22  ;;  %1058 = vmatmul.bf16.gmra.mxu1 %v1882_v23  ;;  %v1762_v23 = vor.u32 %v1944_v16, %v1761_v15 }
  0xc2   :  { %1156 = vmatmul.bf16.gmra.mxu3 %v1890_v27  ;;  %v2009_v27 = vunpack.c.l.bf16 %v2055_v25 }
  0xc3   :  { %1107 = vmatmul.bf16.gmra.mxu2 %v1886_v26  ;;  %v2062_v26 = vld [vmem:[#allocation10 + $0x28] sm:$0xff]  }
  0xc4   :  { %v2041_v29 = vunpack.c.l.bf16 %v2062_v26  ;;  %v2042_v30 = vunpack.c.h.bf16 %v2062_v26 }
  0xc6   :  { %v1404_v33 = vmul.f32 %v2041_v29, %v2009_v27 }
  0xd0   :  { %1014 = vmatmul.bf16.gmra.mxu0 %v1906_v34  ;;  %1063 = vmatmul.bf16.gmra.mxu1 %v1910_v35  ;;  %v1405_v34 = vmul.f32 %v2042_v30, %v2010_v28 }
  0xd2   :  { %1161 = vmatmul.bf16.gmra.mxu3 %v1918_v39  ;;  %v1781_v39 = vld [vmem:[#allocation2 + $0x80] sm:$0xf] }
  0xd3   :  { %1112 = vmatmul.bf16.gmra.mxu2 %v1914_v38  ;;  %v1415_v38 = vpack.c.bf16 %v1405_v34, %v1404_v33  ;;  %v1782_v45 = vor.u32 %v1950_v40, %v1781_v39  ;;  %v1837_v33 = vld [vmem:[#allocation2 + $0xf0] sm:$0xf]  ;;  %v1964_v34 = vld [vmem:[#allocation2 + $0x108] sm:$0xf0]  ;;  %v1965_v39 = vld [vmem:[#allocation2 + $0x110] sm:$0xf0] }
  0xd4   :  { %v1838_v40 = vor.u32 %v1964_v34, %v1837_v33  ;;  %v1978_v33 = vld [vmem:[#allocation2 + $0x178] sm:$0xf0]  ;;  %v1975_v34 = vld [vmem:[#allocation2 + $0x164] sm:$0xf] }
  0xd5   :  { %1428 = vmatpush.bf16.xpose.msrb.mxu3 %v1415_v38  ;;  %v1845_v38 = vld [vmem:[#allocation2 + $0xf8] sm:$0xf] }
  0xdd   :  { %v980_v57 = vpop.f32.mrf.mxu0  ;;  %v1029_v58 = vpop.f32.mrf.mxu1 }
  0xde   :  { %v1030_v59 = vadd.f32 %v1029_v58, %v980_v57  ;;  %v2037_v57 = vunpack.c.l.bf16 %v2061_v54  ;;  %v2038_v58 = vunpack.c.h.bf16 %v2061_v54 }
  0xe0   :  { %1175 = vmatmul.bf16.vlgmr.msrb.gmra.mxu0 %v1726_v55  ;;  %1224 = vmatmul.bf16.vlgmr.msrb.gmra.mxu1 %v1730_v56  ;;  %v2005_v55 = vunpack.c.l.bf16 %v2054_v53  ;;  %v2006_v56 = vunpack.c.h.bf16 %v2054_v53 }
  0xe2   :  { %v1402_v61 = vmul.f32 %v2037_v57, %v2005_v55  ;;  %v1403_v62 = vmul.f32 %v2038_v58, %v2006_v56 }
  0xe3   :  { %1273 = vmatmul.bf16.vlgmr.msrb.gmra.mxu2 %v1734_v60 }
  0xe4   :  { %v1414_v2 = vpack.c.bf16 %v1403_v62, %v1402_v61 }
  0xe5   :  { %v982_v4 = vpop.f32.mrf.mxu0  ;;  %v1031_v8 = vpop.f32.mrf.mxu1 }
  0xe6   :  { %v1078_v3 = vpop.f32.mrf.mxu2  ;;  %v1032_v9 = vadd.f32 %v1031_v8, %v982_v4  ;;  %v1957_v4 = vld [vmem:[#allocation2 + $0xd0] sm:$0xf0]  ;;  %1429 = vmatpush.bf16.xpose.msrb.mxu3 %v1414_v2  ;;  %v1817_v8 = vld [vmem:[#allocation2 + $0xc0] sm:$0xf]  ;;  %v1968_v2 = vld [vmem:[#allocation2 + $0x12c] sm:$0xf] }
  0xe7   :  { %v2371_v7 = vadd.f32 %v1078_v3, %v1030_v59  ;;  %v1809_v3 = vld [vmem:[#allocation2 + $0xb8] sm:$0xf] }
  0xe8   :  { %v1810_v10 = vor.u32 %v1957_v4, %v1809_v3  ;;  %v1867_v3 = vld [vmem:[#allocation2 + $0x144] sm:$0xf0]  ;;  %v1873_v4 = vld [vmem:[#allocation2 + $0x130] sm:$0xf] }
  0xed   :  { %v985_v20 = vpop.f32.mrf.mxu0  ;;  %v1034_v22 = vpop.f32.mrf.mxu1 }
  0xee   :  { %v1080_v19 = vpop.f32.mrf.mxu2  ;;  %v1035_v24 = vadd.f32 %v1034_v22, %v985_v20 }
  0xef   :  { %v2373_v21 = vadd.f32 %v1080_v19, %v1032_v9  ;;  %v1958_v9 = vld [vmem:[#allocation2 + $0xd8] sm:$0xf0] }
  0xf0   :  { %1180 = vmatmul.bf16.gmra.mxu0 %v1754_v17  ;;  %1229 = vmatmul.bf16.gmra.mxu1 %v1758_v18  ;;  %v1818_v16 = vor.u32 %v1958_v9, %v1817_v8  ;;  %v2053_v18 = vld [vmem:[#allocation8 + $0x18] sm:$0xff]   ;;  %v1870_v8 = vor.u32 %v1968_v2, %v1867_v3 }
  0xf1   :  { %v2060_v19 = vld [vmem:[#allocation10 + $0x18] sm:$0xff]   ;;  %v2001_v20 = vunpack.c.l.bf16 %v2053_v18  ;;  %v2002_v22 = vunpack.c.h.bf16 %v2053_v18 }
  0xf2   :  { %v1921_v3 = vld [vmem:[#allocation2 + $0x198] sm:$0xf] }
  0xf3   :  { %1278 = vmatmul.bf16.gmra.mxu2 %v1762_v23  ;;  %v2033_v23 = vunpack.c.l.bf16 %v2060_v19 }
  0xf5   :  { %v987_v32 = vpop.f32.mrf.mxu0  ;;  %v1036_v36 = vpop.f32.mrf.mxu1  ;;  %v1400_v27 = vmul.f32 %v2033_v23, %v2001_v20 }
  0xf6   :  { %v1083_v31 = vpop.f32.mrf.mxu2  ;;  %v1037_v37 = vadd.f32 %v1036_v36, %v987_v32  ;;  %v1961_v36 = vld [vmem:[#allocation2 + $0xf4] sm:$0xf] }
  0xf7   :  { %v2375_v35 = vadd.f32 %v1083_v31, %v1035_v24  ;;  %v2034_v24 = vunpack.c.h.bf16 %v2060_v19 }
  0xf9   :  { %v1401_v28 = vmul.f32 %v2034_v24, %v2002_v22 }
  0xfb   :  { %v1413_v32 = vpack.c.bf16 %v1401_v28, %v1400_v27 }
  0xfd   :  { %v990_v48 = vpop.f32.mrf.mxu0  ;;  %v1039_v50 = vpop.f32.mrf.mxu1  ;;  %1430 = vmatpush.bf16.xpose.msrb.mxu3 %v1413_v32  ;;  %v1893_v32 = vld [vmem:[#allocation2 + $0x160] sm:$0xf] }
  0xfe   :  { %v1085_v47 = vpop.f32.mrf.mxu2  ;;  %v1040_v52 = vadd.f32 %v1039_v50, %v990_v48  ;;  %v2052_v48 = vld [vmem:[#allocation8 + $0x10] sm:$0xff]  }
  0xff   :  { %v2377_v49 = vadd.f32 %v1085_v47, %v1037_v37  ;;  %v1839_v37 = vld [vmem:[#allocation2 + $0x10c] sm:$0xf0] }
 0x100   :  { %1185 = vmatmul.bf16.gmra.mxu0 %v1782_v45  ;;  %1234 = vmatmul.bf16.gmra.mxu1 %v1786_v46  ;;  %v1842_v41 = vor.u32 %v1961_v36, %v1839_v37  ;;  %v1846_v46 = vor.u32 %v1965_v39, %v1845_v38  ;;  %v2059_v50 = vld [vmem:[#allocation10 + $0x10] sm:$0xff]   ;;  %v1895_v36 = vld [vmem:[#allocation2 + $0x17c] sm:$0xf0]  ;;  %v1901_v37 = vld [vmem:[#allocation2 + $0x168] sm:$0xf]  ;;  %v1127_v39 = vpop.f32.mrf.mxu3 }
 0x101   :  { %v2029_v53 = vunpack.c.l.bf16 %v2059_v50  ;;  %v2030_v54 = vunpack.c.h.bf16 %v2059_v50  ;;  %v1979_v38 = vld [vmem:[#allocation2 + $0x180] sm:$0xf0] }
 0x102   :  { %v1988_v50 = vld [vmem:[#allocation8] sm:$0xff]  }
 0x103   :  { %1283 = vmatmul.bf16.gmra.mxu2 %v1790_v51  ;;  %v1997_v51 = vunpack.c.l.bf16 %v2052_v48 }
 0x105   :  { %v992_v60 = vpop.f32.mrf.mxu0  ;;  %v1041_v0 = vpop.f32.mrf.mxu1  ;;  %v1398_v57 = vmul.f32 %v2029_v53, %v1997_v51  ;;  %v2020_v51 = vld [vmem:[#allocation10] sm:$0xff]   ;;  %v1990_v53 = vunpack.c.h.bf16 %v1988_v50 }
 0x106   :  { %v1088_v59 = vpop.f32.mrf.mxu2  ;;  %v1042_v1 = vadd.f32 %v1041_v0, %v992_v60  ;;  %v1865_v0 = vld [vmem:[#allocation2 + $0x128] sm:$0xf] }
 0x107   :  { %v2379_v63 = vadd.f32 %v1088_v59, %v1040_v52  ;;  %v1998_v52 = vunpack.c.h.bf16 %v2052_v48 }
 0x109   :  { %v1399_v58 = vmul.f32 %v2030_v54, %v1998_v52  ;;  %v1989_v52 = vunpack.c.l.bf16 %v1988_v50  ;;  %v2021_v54 = vunpack.c.l.bf16 %v2020_v51 }
 0x10b   :  { %v1412_v62 = vpack.c.bf16 %v1399_v58, %v1398_v57 }
 0x10d   :  { %v995_v13 = vpop.f32.mrf.mxu0  ;;  %v1044_v15 = vpop.f32.mrf.mxu1  ;;  %1431 = vmatpush.bf16.xpose.msrb.mxu3 %v1412_v62 }
 0x10e   :  { %v1090_v12 = vpop.f32.mrf.mxu2  ;;  %v1045_v17 = vadd.f32 %v1044_v15, %v995_v13  ;;  %v1874_v13 = vor.u32 %v1972_v5, %v1873_v4  ;;  %v1129_v62 = vpop.f32.mrf.mxu3  ;;  %v1985_v4 = vld [vmem:[#allocation2 + $0x1b0] sm:$0xf0]  ;;  %v1982_v5 = vld [vmem:[#allocation2 + $0x19c] sm:$0xf] }
 0x10f   :  { %v2381_v14 = vadd.f32 %v1090_v12, %v1042_v1  ;;  %v1971_v1 = vld [vmem:[#allocation2 + $0x140] sm:$0xf0] }
 0x110   :  { %1190 = vmatmul.bf16.gmra.mxu0 %v1810_v10  ;;  %1239 = vmatmul.bf16.gmra.mxu1 %v1814_v11  ;;  %v1866_v6 = vor.u32 %v1971_v1, %v1865_v0 }
 0x113   :  { %1288 = vmatmul.bf16.gmra.mxu2 %v1818_v16  ;;  %v2051_v16 = vld [vmem:[#allocation8 + $0x8] sm:$0xff]  }
 0x114   :  { %v1993_v18 = vunpack.c.l.bf16 %v2051_v16  ;;  %v1994_v19 = vunpack.c.h.bf16 %v2051_v16 }
 0x115   :  { %v997_v26 = vpop.f32.mrf.mxu0  ;;  %v1046_v30 = vpop.f32.mrf.mxu1 }
 0x116   :  { %v1093_v25 = vpop.f32.mrf.mxu2  ;;  %v1047_v31 = vadd.f32 %v1046_v30, %v997_v26 }
 0x117   :  { %v2383_v29 = vadd.f32 %v1093_v25, %v1045_v17  ;;  %v2058_v17 = vld [vmem:[#allocation10 + $0x8] sm:$0xff]  }
 0x118   :  { %v2025_v20 = vunpack.c.l.bf16 %v2058_v17  ;;  %v2026_v22 = vunpack.c.h.bf16 %v2058_v17 }
 0x11a   :  { %v1396_v25 = vmul.f32 %v2025_v20, %v1993_v18  ;;  %v1397_v26 = vmul.f32 %v2026_v22, %v1994_v19  ;;  %v1132_v20 = vpop.f32.mrf.mxu3 }
 0x11d   :  { %v1000_v43 = vpop.f32.mrf.mxu0  ;;  %v1049_v45 = vpop.f32.mrf.mxu1 }
 0x11e   :  { %v1095_v42 = vpop.f32.mrf.mxu2  ;;  %v1050_v47 = vadd.f32 %v1049_v45, %v1000_v43 }
 0x11f   :  { %v2385_v44 = vadd.f32 %v1095_v42, %v1047_v31  ;;  %v1411_v31 = vpack.c.bf16 %v1397_v26, %v1396_v25 }
 0x120   :  { %1195 = vmatmul.bf16.gmra.mxu0 %v1838_v40  ;;  %1244 = vmatmul.bf16.gmra.mxu1 %v1842_v41  ;;  %v1894_v40 = vor.u32 %v1978_v33, %v1893_v32  ;;  %v1898_v41 = vor.u32 %v1975_v34, %v1895_v36  ;;  %v1128_v34 = vadd.f32 %v1127_v39, %v2371_v7 }
 0x121   :  { %1432 = vmatpush.bf16.xpose.msrb.mxu3 %v1411_v31  ;;  %v1133_v7 = vadd.f32 %v1132_v20, %v2375_v35 }
 0x123   :  { %1293 = vmatmul.bf16.gmra.mxu2 %v1846_v46 }
 0x125   :  { %v1002_v56 = vpop.f32.mrf.mxu0  ;;  %v1051_v60 = vpop.f32.mrf.mxu1 }
 0x126   :  { %v1098_v55 = vpop.f32.mrf.mxu2  ;;  %v1052_v61 = vadd.f32 %v1051_v60, %v1002_v56  ;;  %v1394_v56 = vmul.f32 %v2021_v54, %v1989_v52 }
 0x127   :  { %v2387_v59 = vadd.f32 %v1098_v55, %v1050_v47  ;;  %v1902_v47 = vor.u32 %v1979_v38, %v1901_v37  ;;  %v2022_v55 = vunpack.c.h.bf16 %v2020_v51 }
 0x129   :  { %v1395_v57 = vmul.f32 %v2022_v55, %v1990_v53 }
 0x12d   :  { %v1005_v10 = vpop.f32.mrf.mxu0  ;;  %v1054_v12 = vpop.f32.mrf.mxu1 }
 0x12e   :  { %v1100_v9 = vpop.f32.mrf.mxu2  ;;  %v1055_v15 = vadd.f32 %v1054_v12, %v1005_v10  ;;  %v1922_v10 = vor.u32 %v1985_v4, %v1921_v3 }
 0x12f   :  { %v2389_v11 = vadd.f32 %v1100_v9, %v1052_v61  ;;  %v1410_v61 = vpack.c.bf16 %v1395_v57, %v1394_v56  ;;  %v1986_v9 = vld [vmem:[#allocation2 + $0x1b8] sm:$0xf0] }
 0x130   :  { %1200 = vmatmul.bf16.gmra.mxu0 %v1866_v6  ;;  %1249 = vmatmul.bf16.gmra.mxu1 %v1870_v8  ;;  %v1923_v6 = vld [vmem:[#allocation2 + $0x1b4] sm:$0xf0]  ;;  %v1929_v8 = vld [vmem:[#allocation2 + $0x1a0] sm:$0xf] }
 0x131   :  { %1433 = vmatpush.bf16.xpose.msrb.mxu3 %v1410_v61  ;;  %v1926_v12 = vor.u32 %v1982_v5, %v1923_v6  ;;  %v1930_v18 = vor.u32 %v1986_v9, %v1929_v8 }
 0x133   :  { %1298 = vmatmul.bf16.gmra.mxu2 %v1874_v13 }
 0x135   :  { %v1007_v24 = vpop.f32.mrf.mxu0  ;;  %v1056_v28 = vpop.f32.mrf.mxu1 }
 0x136   :  { %v1103_v23 = vpop.f32.mrf.mxu2  ;;  %v1057_v30 = vadd.f32 %v1056_v28, %v1007_v24  ;;  %v1134_v28 = vpop.f32.mrf.mxu3 }
 0x137   :  { %v2391_v27 = vadd.f32 %v1103_v23, %v1055_v15 }
 0x13d   :  { %v1010_v43 = vpop.f32.mrf.mxu0  ;;  %v1059_v46 = vpop.f32.mrf.mxu1 }
 0x13e   :  { %v1105_v42 = vpop.f32.mrf.mxu2  ;;  %v1060_v48 = vadd.f32 %v1059_v46, %v1010_v43  ;;  %v1137_v36 = vpop.f32.mrf.mxu3 }
 0x13f   :  { %v2393_v45 = vadd.f32 %v1105_v42, %v1057_v30 }
 0x140   :  { %1205 = vmatmul.bf16.gmra.mxu0 %v1894_v40  ;;  %1254 = vmatmul.bf16.gmra.mxu1 %v1898_v41  ;;  %v1130_v40 = vadd.f32 %v1129_v62, %v2373_v21  ;;  %v1135_v21 = vadd.f32 %v1134_v28, %v2377_v49 }
 0x143   :  { %1303 = vmatmul.bf16.gmra.mxu2 %v1902_v47 }
 0x145   :  { %v1012_v60 = vpop.f32.mrf.mxu0  ;;  %v1061_v1 = vpop.f32.mrf.mxu1 }
 0x146   :  { %v1108_v58 = vpop.f32.mrf.mxu2  ;;  %v1062_v2 = vadd.f32 %v1061_v1, %v1012_v60  ;;  %v1139_v52 = vpop.f32.mrf.mxu3 }
 0x147   :  { %v2395_v0 = vadd.f32 %v1108_v58, %v1060_v48 }
 0x14d   :  { %v1015_v15 = vpop.f32.mrf.mxu0  ;;  %v1064_v17 = vpop.f32.mrf.mxu1 }
 0x14e   :  { %v1110_v13 = vpop.f32.mrf.mxu2  ;;  %v1065_v19 = vadd.f32 %v1064_v17, %v1015_v15  ;;  %v1142_v62 = vpop.f32.mrf.mxu3  ;;  %v1138_v15 = vadd.f32 %v1137_v36, %v2379_v63 }
 0x14f   :  { %v2397_v16 = vadd.f32 %v1110_v13, %v1062_v2  ;;  %v1143_v63 = vadd.f32 %v1142_v62, %v2383_v29 }
 0x150   :  { %1210 = vmatmul.bf16.gmra.mxu0 %v1922_v10  ;;  %1259 = vmatmul.bf16.gmra.mxu1 %v1926_v12 }
 0x153   :  { %1308 = vmatmul.bf16.gmra.mxu2 %v1930_v18  ;;  %v1140_v18 = vadd.f32 %v1139_v52, %v2381_v14 }
 0x155   :  { %v1017_v23 = vpop.f32.mrf.mxu0  ;;  %v1066_v25 = vpop.f32.mrf.mxu1 }
 0x156   :  { %v1113_v22 = vpop.f32.mrf.mxu2  ;;  %v1067_v26 = vadd.f32 %v1066_v25, %v1017_v23  ;;  %v1144_v13 = vpop.f32.mrf.mxu3 }
 0x157   :  { %v2399_v24 = vadd.f32 %v1113_v22, %v1065_v19  ;;  %v1145_v14 = vadd.f32 %v1144_v13, %v2385_v44 }
 0x15d   :  { %v1176_v31 = vpop.f32.mrf.mxu0  ;;  %v1225_v33 = vpop.f32.mrf.mxu1 }
 0x15e   :  { %v1115_v30 = vpop.f32.mrf.mxu2  ;;  %v1177_v41 = vadd.f32 %v1176_v31, %v1128_v34  ;;  %v1147_v25 = vpop.f32.mrf.mxu3 }
 0x15f   :  { %v2401_v32 = vadd.f32 %v1115_v30, %v1067_v26 }
 0x160   :  { %v1226_v46 = vadd.f32 %v1225_v33, %v1177_v41 }
 0x165   :  { %v1178_v38 = vpop.f32.mrf.mxu0  ;;  %v1227_v42 = vpop.f32.mrf.mxu1 }
 0x166   :  { %v1274_v37 = vpop.f32.mrf.mxu2  ;;  %v1179_v43 = vadd.f32 %v1178_v38, %v1130_v40 }
 0x167   :  { %v1275_v47 = vadd.f32 %v1274_v37, %v1226_v46 }
 0x168   :  { %v1228_v48 = vadd.f32 %v1227_v42, %v1179_v43  ;;  %v1149_v42 = vpop.f32.mrf.mxu3 }
 0x169   :  { %v1314_v55 = vmax.f32 %v1275_v47, 0.0 }
 0x16d   :  { %v1181_v51 = vpop.f32.mrf.mxu0  ;;  %v1230_v54 = vpop.f32.mrf.mxu1 }
 0x16e   :  { %v1276_v50 = vpop.f32.mrf.mxu2  ;;  %v1182_v60 = vadd.f32 %v1181_v51, %v1133_v7 }
 0x16f   :  { %v1277_v53 = vadd.f32 %v1276_v50, %v1228_v48 }
 0x170   :  { %v1231_v2 = vadd.f32 %v1230_v54, %v1182_v60 }
 0x171   :  { %v1315_v56 = vmax.f32 %v1277_v53, 0.0 }
 0x173   :  { %v1418_v57 = vpack.c.bf16 %v1315_v56, %v1314_v55  ;;  %v1152_v56 = vpop.f32.mrf.mxu3 }
 0x175   :  { %1434 = vmatmul.bf16.vlgmr.msrb.gmra.mxu3 %v1418_v57  ;;  %v1183_v58 = vpop.f32.mrf.mxu0  ;;  %v1232_v61 = vpop.f32.mrf.mxu1 }
 0x176   :  { %v1279_v39 = vpop.f32.mrf.mxu2  ;;  %v1184_v1 = vadd.f32 %v1183_v58, %v1135_v21  ;;  %v1150_v21 = vadd.f32 %v1149_v42, %v2389_v11 }
 0x177   :  { %v1280_v3 = vadd.f32 %v1279_v39, %v1231_v2  ;;  %v1148_v39 = vadd.f32 %v1147_v25, %v2387_v59  ;;  %v1153_v59 = vadd.f32 %v1152_v56, %v2391_v27 }
 0x178   :  { %v1233_v4 = vadd.f32 %v1232_v61, %v1184_v1 }
 0x179   :  { %v1316_v10 = vmax.f32 %v1280_v3, 0.0 }
 0x17b   :  { %v1154_v1 = vpop.f32.mrf.mxu3 }
 0x17d   :  { %v1186_v6 = vpop.f32.mrf.mxu0  ;;  %v1235_v9 = vpop.f32.mrf.mxu1 }
 0x17e   :  { %v1281_v5 = vpop.f32.mrf.mxu2  ;;  %v1187_v19 = vadd.f32 %v1186_v6, %v1138_v15 }
 0x17f   :  { %v1282_v8 = vadd.f32 %v1281_v5, %v1233_v4 }
 0x180   :  { %v1236_v23 = vadd.f32 %v1235_v9, %v1187_v19 }
 0x181   :  { %v1317_v12 = vmax.f32 %v1282_v8, 0.0 }
 0x183   :  { %v1419_v35 = vpack.c.bf16 %v1317_v12, %v1316_v10 }
 0x185   :  { %1439 = vmatmul.bf16.gmra.mxu3 %v1419_v35  ;;  %v1188_v49 = vpop.f32.mrf.mxu0  ;;  %v1237_v20 = vpop.f32.mrf.mxu1 }
 0x186   :  { %v1284_v17 = vpop.f32.mrf.mxu2  ;;  %v1189_v22 = vadd.f32 %v1188_v49, %v1140_v18  ;;  %v1157_v35 = vpop.f32.mrf.mxu3 }
 0x187   :  { %v1285_v26 = vadd.f32 %v1284_v17, %v1236_v23  ;;  %v1155_v17 = vadd.f32 %v1154_v1, %v2393_v45 }
 0x188   :  { %v1238_v28 = vadd.f32 %v1237_v20, %v1189_v22 }
 0x189   :  { %v1318_v37 = vmax.f32 %v1285_v26, 0.0 }
 0x18d   :  { %v1191_v31 = vpop.f32.mrf.mxu0  ;;  %v1240_v34 = vpop.f32.mrf.mxu1 }
 0x18e   :  { %v1286_v30 = vpop.f32.mrf.mxu2  ;;  %v1192_v43 = vadd.f32 %v1191_v31, %v1143_v63  ;;  %v1159_v31 = vpop.f32.mrf.mxu3 }
 0x18f   :  { %v1287_v33 = vadd.f32 %v1286_v30, %v1238_v28  ;;  %v1160_v45 = vadd.f32 %v1159_v31, %v2397_v16 }
 0x190   :  { %v1241_v48 = vadd.f32 %v1240_v34, %v1192_v43 }
 0x191   :  { %v1319_v38 = vmax.f32 %v1287_v33, 0.0 }
 0x193   :  { %v1420_v40 = vpack.c.bf16 %v1319_v38, %v1318_v37  ;;  %v1158_v37 = vadd.f32 %v1157_v35, %v2395_v0 }
 0x195   :  { %1444 = vmatmul.bf16.gmra.mxu3 %v1420_v40  ;;  %v1193_v41 = vpop.f32.mrf.mxu0  ;;  %v1242_v46 = vpop.f32.mrf.mxu1 }
 0x196   :  { %v1289_v36 = vpop.f32.mrf.mxu2  ;;  %v1194_v47 = vadd.f32 %v1193_v41, %v1145_v14  ;;  %v1162_v14 = vpop.f32.mrf.mxu3 }
 0x197   :  { %v1290_v50 = vadd.f32 %v1289_v36, %v1241_v48 }
 0x198   :  { %v1243_v51 = vadd.f32 %v1242_v46, %v1194_v47 }
 0x199   :  { %v1320_v57 = vmax.f32 %v1290_v50, 0.0 }
 0x19d   :  { %v1196_v53 = vpop.f32.mrf.mxu0  ;;  %v1245_v55 = vpop.f32.mrf.mxu1 }
 0x19e   :  { %v1291_v52 = vpop.f32.mrf.mxu2  ;;  %v1197_v60 = vadd.f32 %v1196_v53, %v1148_v39  ;;  %v1164_v0 = vpop.f32.mrf.mxu3 }
 0x19f   :  { %v1292_v54 = vadd.f32 %v1291_v52, %v1243_v51 }
 0x1a0   :  { %v1246_v2 = vadd.f32 %v1245_v55, %v1197_v60  ;;  %v1163_v55 = vadd.f32 %v1162_v14, %v2399_v24 }
 0x1a1   :  { %v1321_v7 = vmax.f32 %v1292_v54, 0.0 }
 0x1a3   :  { %v1421_v29 = vpack.c.bf16 %v1321_v7, %v1320_v57  ;;  %v1165_v57 = vadd.f32 %v1164_v0, %v2401_v32 }
 0x1a5   :  { %1449 = vmatmul.bf16.gmra.mxu3 %v1421_v29  ;;  %v1198_v44 = vpop.f32.mrf.mxu0  ;;  %v1247_v61 = vpop.f32.mrf.mxu1 }
 0x1a6   :  { %v1294_v58 = vpop.f32.mrf.mxu2  ;;  %v1199_v62 = vadd.f32 %v1198_v44, %v1150_v21 }
 0x1a7   :  { %v1295_v3 = vadd.f32 %v1294_v58, %v1246_v2 }
 0x1a8   :  { %v1248_v4 = vadd.f32 %v1247_v61, %v1199_v62 }
 0x1a9   :  { %v1322_v10 = vmax.f32 %v1295_v3, 0.0  ;;  %v1475_v3 = vlaneseq }
 0x1ad   :  { %v1201_v6 = vpop.f32.mrf.mxu0  ;;  %v1250_v9 = vpop.f32.mrf.mxu1 }
 0x1ae   :  { %v1296_v5 = vpop.f32.mrf.mxu2  ;;  %v1202_v49 = vadd.f32 %v1201_v6, %v1153_v59 }
 0x1af   :  { %v1297_v8 = vadd.f32 %v1296_v5, %v1248_v4  ;;  %v2419_v4 = vand.u32 127, %v1475_v3 }
 0x1b0   :  { %v1251_v20 = vadd.f32 %v1250_v9, %v1202_v49 }
 0x1b1   :  { %v1323_v12 = vmax.f32 %v1297_v8, 0.0  ;;  %vm1477_vm0 = vcmp.lt.s32.totalorder %v2419_v4, 10 }
 0x1b3   :  { %v1422_v13 = vpack.c.bf16 %v1323_v12, %v1322_v10 }
 0x1b5   :  { %1454 = vmatmul.bf16.gmra.mxu3 %v1422_v13  ;;  %v1203_v11 = vpop.f32.mrf.mxu0  ;;  %v1252_v18 = vpop.f32.mrf.mxu1 }
 0x1b6   :  { %v1299_v15 = vpop.f32.mrf.mxu2  ;;  %v1204_v19 = vadd.f32 %v1203_v11, %v1155_v17 }
 0x1b7   :  { %v1300_v22 = vadd.f32 %v1299_v15, %v1251_v20 }
 0x1b8   :  { %v1253_v23 = vadd.f32 %v1252_v18, %v1204_v19 }
 0x1b9   :  { %v1324_v33 = vmax.f32 %v1300_v22, 0.0 }
 0x1bd   :  { %v1206_v26 = vpop.f32.mrf.mxu0  ;;  %v1255_v30 = vpop.f32.mrf.mxu1 }
 0x1be   :  { %v1301_v25 = vpop.f32.mrf.mxu2  ;;  %v1207_v63 = vadd.f32 %v1206_v26, %v1158_v37 }
 0x1bf   :  { %v1302_v28 = vadd.f32 %v1301_v25, %v1253_v23 }
 0x1c0   :  { %v1256_v42 = vadd.f32 %v1255_v30, %v1207_v63 }
 0x1c1   :  { %v1325_v34 = vmax.f32 %v1302_v28, 0.0 }
 0x1c3   :  { %v1423_v27 = vpack.c.bf16 %v1325_v34, %v1324_v33 }
 0x1c5   :  { %1459 = vmatmul.bf16.gmra.mxu3 %v1423_v27  ;;  %v1208_v40 = vpop.f32.mrf.mxu0  ;;  %v1257_v36 = vpop.f32.mrf.mxu1 }
 0x1c6   :  { %v1304_v38 = vpop.f32.mrf.mxu2  ;;  %v1209_v41 = vadd.f32 %v1208_v40, %v1160_v45 }
 0x1c7   :  { %v1305_v43 = vadd.f32 %v1304_v38, %v1256_v42 }
 0x1c8   :  { %v1258_v46 = vadd.f32 %v1257_v36, %v1209_v41 }
 0x1c9   :  { %v1326_v51 = vmax.f32 %v1305_v43, 0.0 }
 0x1cd   :  { %v1211_v48 = vpop.f32.mrf.mxu0  ;;  %v1260_v53 = vpop.f32.mrf.mxu1 }
 0x1ce   :  { %v1306_v47 = vpop.f32.mrf.mxu2  ;;  %v1212_v7 = vadd.f32 %v1211_v48, %v1163_v55 }
 0x1cf   :  { %v1307_v50 = vadd.f32 %v1306_v47, %v1258_v46 }
 0x1d0   :  { %v1261_v39 = vadd.f32 %v1260_v53, %v1212_v7 }
 0x1d1   :  { %v1327_v52 = vmax.f32 %v1307_v50, 0.0 }
 0x1d3   :  { %v1424_v54 = vpack.c.bf16 %v1327_v52, %v1326_v51 }
 0x1d5   :  { %1464 = vmatmul.bf16.gmra.mxu3 %v1424_v54  ;;  %v1213_v16 = vpop.f32.mrf.mxu0  ;;  %v1262_v58 = vpop.f32.mrf.mxu1 }
 0x1d6   :  { %v1309_v56 = vpop.f32.mrf.mxu2  ;;  %v1214_v29 = vadd.f32 %v1213_v16, %v1165_v57 }
 0x1d7   :  { %v1310_v44 = vadd.f32 %v1309_v56, %v1261_v39 }
 0x1d8   :  { %v1263_v21 = vadd.f32 %v1262_v58, %v1214_v29 }
 0x1d9   :  { %v1328_v62 = vmax.f32 %v1310_v44, 0.0 }
 0x1de   :  { %v1311_v60 = vpop.f32.mrf.mxu2 }
 0x1df   :  { %v1312_v61 = vadd.f32 %v1311_v60, %v1263_v21 }
 0x1e1   :  { %v1329_v1 = vmax.f32 %v1312_v61, 0.0 }
 0x1e3   :  { %v1425_v2 = vpack.c.bf16 %v1329_v1, %v1328_v62 }
 0x1e5   :  { %1469 = vmatmul.bf16.gmra.mxu3 %v1425_v2 }
 0x1f8   :  { %v1435_v24 = vpop.f32.mrf.mxu3 }
 0x1f9   :  { %v1478_v32 = vsel %vm1477_vm0, %v1435_v24, -1e+30 }
 0x1fa   :  { %1494 = vmax.xlane.f32.xlu0 %v1478_v32 }
 0x200   :  { %v1437_v5 = vpop.f32.mrf.mxu3 }
 0x201   :  { %v1479_v6 = vsel %vm1477_vm0, %v1437_v5, -1e+30 }
 0x202   :  { %1496 = vmax.xlane.f32.xlu0 %v1479_v6 }
 0x208   :  { %v1440_v8 = vpop.f32.mrf.mxu3 }
 0x209   :  { %v1480_v9 = vsel %vm1477_vm0, %v1440_v8, -1e+30 }
 0x20a   :  { %1498 = vmax.xlane.f32.xlu1 %v1480_v9 }
 0x210   :  { %v1442_v10 = vpop.f32.mrf.mxu3 }
 0x211   :  { %v1481_v12 = vsel %vm1477_vm0, %v1442_v10, -1e+30 }
 0x212   :  { %1500 = vmax.xlane.f32.xlu1 %v1481_v12 }
 0x218   :  { %v1445_v13 = vpop.f32.mrf.mxu3 }
 0x219   :  { %v1482_v59 = vsel %vm1477_vm0, %v1445_v13, -1e+30 }
 0x21a   :  { %1502 = vmax.xlane.f32.xlu2 %v1482_v59 }
 0x220   :  { %v2432_v35 = vpop.f32.mrf.mxu3 }
 0x221   :  { %v1483_v15 = vsel %vm1477_vm0, %v2432_v35, -1e+30 }
 0x222   :  { %1504 = vmax.xlane.f32.xlu2 %v1483_v15 }
 0x228   :  { %v2437_v11 = vpop.f32.mrf.mxu3 }
 0x229   :  { %v1484_v17 = vsel %vm1477_vm0, %v2437_v11, -1e+30 }
 0x22a   :  { %1506 = vmax.xlane.f32.xlu0 %v1484_v17 }
 0x230   :  { %v2442_v49 = vpop.f32.mrf.mxu3 }
 0x231   :  { %v1485_v18 = vsel %vm1477_vm0, %v2442_v49, -1e+30 }
 0x232   :  { %1508 = vmax.xlane.f32.xlu1 %v1485_v18 }
 0x238   :  { %v2447_v19 = vpop.f32.mrf.mxu3 }
 0x239   :  { %v1486_v20 = vsel %vm1477_vm0, %v2447_v19, -1e+30 }
 0x23a   :  { %1510 = vmax.xlane.f32.xlu2 %v1486_v20 }
 0x240   :  { %v2452_v22 = vpop.f32.mrf.mxu3 }
 0x241   :  { %v1487_v23 = vsel %vm1477_vm0, %v2452_v22, -1e+30 }
 0x242   :  { %1512 = vmax.xlane.f32.xlu0 %v1487_v23 }
 0x248   :  { %v2457_v25 = vpop.f32.mrf.mxu3 }
 0x249   :  { %v1488_v26 = vsel %vm1477_vm0, %v2457_v25, -1e+30 }
 0x24a   :  { %1514 = vmax.xlane.f32.xlu1 %v1488_v26 }
 0x250   :  { %v2462_v28 = vpop.f32.mrf.mxu3 }
 0x251   :  { %v1489_v30 = vsel %vm1477_vm0, %v2462_v28, -1e+30 }
 0x252   :  { %1516 = vmax.xlane.f32.xlu2 %v1489_v30 }
 0x258   :  { %v2467_v31 = vpop.f32.mrf.mxu3 }
 0x259   :  { %v1490_v33 = vsel %vm1477_vm0, %v2467_v31, -1e+30 }
 0x25a   :  { %1518 = vmax.xlane.f32.xlu0 %v1490_v33 }
 0x260   :  { %v2472_v34 = vpop.f32.mrf.mxu3 }
 0x261   :  { %v1491_v27 = vsel %vm1477_vm0, %v2472_v34, -1e+30 }
 0x262   :  { %1520 = vmax.xlane.f32.xlu1 %v1491_v27 }
 0x268   :  { %v2477_v37 = vpop.f32.mrf.mxu3 }
 0x269   :  { %v1492_v38 = vsel %vm1477_vm0, %v2477_v37, -1e+30 }
 0x26a   :  { %1522 = vmax.xlane.f32.xlu2 %v1492_v38 }
 0x26d   :  { %v1495_v40 = vpop.xlane.xlu0 %1494 }
 0x26e   :  { %v2482_v45 = vsub.f32 %v1435_v24, %v1495_v40 }
 0x270   :  { %v1542_v63 = vmul.f32 1.442695, %v2482_v45  ;;  %v2485_v36 = vpop.f32.mrf.mxu3 }
 0x271   :  { %v1493_v41 = vsel %vm1477_vm0, %v2485_v36, -1e+30 }
 0x272   :  { %2077 = vpow2.f32 %v1542_v63  ;;  %1524 = vmax.xlane.f32.xlu0 %v1493_v41 }
 0x275   :  { %v1497_v14 = vpop.xlane.xlu0 %1496 }
 0x276   :  { %v2490_v42 = vsub.f32 %v1437_v5, %v1497_v14 }
 0x278   :  { %v2078_v43 = vpop.eup %2077  ;;  %v1544_v46 = vmul.f32 1.442695, %v2490_v42 }
 0x279   :  { %v1574_v47 = vsel %vm1477_vm0, %v2078_v43, 0.0 }
 0x27a   :  { %2079 = vpow2.f32 %v1544_v46  ;;  %1590 = vadd.xlane.f32.xlu1 %v1574_v47 }
 0x27d   :  { %v1499_v48 = vpop.xlane.xlu1 %1498 }
 0x27e   :  { %v2495_v50 = vsub.f32 %v1440_v8, %v1499_v48 }
 0x280   :  { %v2080_v51 = vpop.eup %2079  ;;  %v1546_v52 = vmul.f32 1.442695, %v2495_v50 }
 0x281   :  { %v1575_v53 = vsel %vm1477_vm0, %v2080_v51, 0.0 }
 0x282   :  { %2081 = vpow2.f32 %v1546_v52  ;;  %1592 = vadd.xlane.f32.xlu2 %v1575_v53 }
 0x285   :  { %v1501_v54 = vpop.xlane.xlu1 %1500 }
 0x286   :  { %v2500_v0 = vsub.f32 %v1442_v10, %v1501_v54 }
 0x288   :  { %v2082_v55 = vpop.eup %2081  ;;  %v1548_v56 = vmul.f32 1.442695, %v2500_v0 }
 0x289   :  { %v1576_v16 = vsel %vm1477_vm0, %v2082_v55, 0.0 }
 0x28a   :  { %2083 = vpow2.f32 %v1548_v56  ;;  %1594 = vadd.xlane.f32.xlu0 %v1576_v16 }
 0x28d   :  { %v1503_v57 = vpop.xlane.xlu2 %1502 }
 0x28e   :  { %v2505_v7 = vsub.f32 %v1445_v13, %v1503_v57 }
 0x290   :  { %v2084_v29 = vpop.eup %2083  ;;  %v1550_v39 = vmul.f32 1.442695, %v2505_v7 }
 0x291   :  { %v1577_v58 = vsel %vm1477_vm0, %v2084_v29, 0.0 }
 0x292   :  { %2085 = vpow2.f32 %v1550_v39  ;;  %1596 = vadd.xlane.f32.xlu1 %v1577_v58 }
 0x295   :  { %v1505_v44 = vpop.xlane.xlu2 %1504 }
 0x296   :  { %v2511_v21 = vsub.f32 %v2432_v35, %v1505_v44 }
 0x298   :  { %v2086_v60 = vpop.eup %2085  ;;  %v1552_v61 = vmul.f32 1.442695, %v2511_v21 }
 0x299   :  { %v1578_v62 = vsel %vm1477_vm0, %v2086_v60, 0.0 }
 0x29a   :  { %2087 = vpow2.f32 %v1552_v61  ;;  %1598 = vadd.xlane.f32.xlu2 %v1578_v62 }
 0x29d   :  { %v1507_v1 = vpop.xlane.xlu0 %1506 }
 0x29e   :  { %v2517_v2 = vsub.f32 %v2437_v11, %v1507_v1 }
 0x2a0   :  { %v2088_v3 = vpop.eup %2087  ;;  %v1554_v24 = vmul.f32 1.442695, %v2517_v2 }
 0x2a1   :  { %v1579_v32 = vsel %vm1477_vm0, %v2088_v3, 0.0 }
 0x2a2   :  { %2089 = vpow2.f32 %v1554_v24  ;;  %1600 = vadd.xlane.f32.xlu0 %v1579_v32 }
 0x2a5   :  { %v1509_v5 = vpop.xlane.xlu1 %1508 }
 0x2a6   :  { %v2523_v6 = vsub.f32 %v2442_v49, %v1509_v5 }
 0x2a8   :  { %v2090_v8 = vpop.eup %2089  ;;  %v1556_v9 = vmul.f32 1.442695, %v2523_v6 }
 0x2a9   :  { %v1580_v10 = vsel %vm1477_vm0, %v2090_v8, 0.0 }
 0x2aa   :  { %2091 = vpow2.f32 %v1556_v9  ;;  %1602 = vadd.xlane.f32.xlu1 %v1580_v10 }
 0x2ad   :  { %v1511_v12 = vpop.xlane.xlu2 %1510 }
 0x2ae   :  { %v2529_v13 = vsub.f32 %v2447_v19, %v1511_v12 }
 0x2b0   :  { %v2092_v59 = vpop.eup %2091  ;;  %v1558_v35 = vmul.f32 1.442695, %v2529_v13 }
 0x2b1   :  { %v1581_v15 = vsel %vm1477_vm0, %v2092_v59, 0.0 }
 0x2b2   :  { %2093 = vpow2.f32 %v1558_v35  ;;  %1604 = vadd.xlane.f32.xlu2 %v1581_v15 }
 0x2b5   :  { %v1513_v11 = vpop.xlane.xlu0 %1512 }
 0x2b6   :  { %v2535_v17 = vsub.f32 %v2452_v22, %v1513_v11 }
 0x2b8   :  { %v2094_v49 = vpop.eup %2093  ;;  %v1560_v18 = vmul.f32 1.442695, %v2535_v17 }
 0x2b9   :  { %v1582_v20 = vsel %vm1477_vm0, %v2094_v49, 0.0 }
 0x2ba   :  { %2095 = vpow2.f32 %v1560_v18  ;;  %1606 = vadd.xlane.f32.xlu0 %v1582_v20 }
 0x2bd   :  { %v1515_v19 = vpop.xlane.xlu1 %1514 }
 0x2be   :  { %v2541_v23 = vsub.f32 %v2457_v25, %v1515_v19 }
 0x2c0   :  { %v2096_v26 = vpop.eup %2095  ;;  %v1562_v30 = vmul.f32 1.442695, %v2541_v23 }
 0x2c1   :  { %v1583_v33 = vsel %vm1477_vm0, %v2096_v26, 0.0 }
 0x2c2   :  { %2097 = vpow2.f32 %v1562_v30  ;;  %1608 = vadd.xlane.f32.xlu1 %v1583_v33 }
 0x2c5   :  { %v1517_v22 = vpop.xlane.xlu2 %1516 }
 0x2c6   :  { %v2547_v27 = vsub.f32 %v2462_v28, %v1517_v22 }
 0x2c8   :  { %v2098_v38 = vpop.eup %2097  ;;  %v1564_v40 = vmul.f32 1.442695, %v2547_v27 }
 0x2c9   :  { %v1584_v63 = vsel %vm1477_vm0, %v2098_v38, 0.0 }
 0x2ca   :  { %2099 = vpow2.f32 %v1564_v40  ;;  %1610 = vadd.xlane.f32.xlu2 %v1584_v63 }
 0x2cd   :  { %v1519_v25 = vpop.xlane.xlu0 %1518 }
 0x2ce   :  { %v2553_v41 = vsub.f32 %v2467_v31, %v1519_v25 }
 0x2d0   :  { %v2100_v14 = vpop.eup %2099  ;;  %v1566_v43 = vmul.f32 1.442695, %v2553_v41 }
 0x2d1   :  { %v1585_v46 = vsel %vm1477_vm0, %v2100_v14, 0.0 }
 0x2d2   :  { %2101 = vpow2.f32 %v1566_v43  ;;  %1612 = vadd.xlane.f32.xlu0 %v1585_v46 }
 0x2d5   :  { %v1521_v28 = vpop.xlane.xlu1 %1520 }
 0x2d6   :  { %v2559_v47 = vsub.f32 %v2472_v34, %v1521_v28 }
 0x2d8   :  { %v2102_v48 = vpop.eup %2101  ;;  %v1568_v51 = vmul.f32 1.442695, %v2559_v47 }
 0x2d9   :  { %v1586_v52 = vsel %vm1477_vm0, %v2102_v48, 0.0 }
 0x2da   :  { %2103 = vpow2.f32 %v1568_v51  ;;  %1614 = vadd.xlane.f32.xlu1 %v1586_v52 }
 0x2dd   :  { %v1523_v31 = vpop.xlane.xlu2 %1522 }
 0x2de   :  { %v2565_v53 = vsub.f32 %v2477_v37, %v1523_v31 }
 0x2e0   :  { %v2104_v54 = vpop.eup %2103  ;;  %v1570_v55 = vmul.f32 1.442695, %v2565_v53 }
 0x2e1   :  { %v1587_v56 = vsel %vm1477_vm0, %v2104_v54, 0.0 }
 0x2e2   :  { %2105 = vpow2.f32 %v1570_v55  ;;  %1616 = vadd.xlane.f32.xlu2 %v1587_v56 }
 0x2e5   :  { %v1525_v34 = vpop.xlane.xlu0 %1524 }
 0x2e6   :  { %v2571_v16 = vsub.f32 %v2485_v36, %v1525_v34 }
 0x2e8   :  { %v2106_v57 = vpop.eup %2105  ;;  %v1572_v29 = vmul.f32 1.442695, %v2571_v16 }
 0x2e9   :  { %v1588_v39 = vsel %vm1477_vm0, %v2106_v57, 0.0 }
 0x2ea   :  { %2107 = vpow2.f32 %v1572_v29  ;;  %1618 = vadd.xlane.f32.xlu0 %v1588_v39 }
 0x2ed   :  { %v1591_v37 = vpop.xlane.xlu1 %1590 }
 0x2ee   :  { %2109 = vlog2.f32 %v1591_v37 }
 0x2f0   :  { %v2108_v58 = vpop.eup %2107 }
 0x2f1   :  { %v1589_v44 = vsel %vm1477_vm0, %v2108_v58, 0.0 }
 0x2f2   :  { %1620 = vadd.xlane.f32.xlu1 %v1589_v44 }
 0x2f4   :  { %v2110_v60 = vpop.eup %2109 }
 0x2f5   :  { %v1623_v61 = vmul.f32 0.6931472, %v2110_v60  ;;  %v1593_v62 = vpop.xlane.xlu2 %1592 }
 0x2f6   :  { %2111 = vlog2.f32 %v1593_v62 }
 0x2f7   :  { %v1654_v36 = vsub.f32 %v2482_v45, %v1623_v61 }
 0x2f9   :  { %1670 = vst [vmem:[#allocation11] sm:$0xff] %v1654_v36 }
 0x2fc   :  { %v2112_v1 = vpop.eup %2111 }
 0x2fd   :  { %v1625_v3 = vmul.f32 0.6931472, %v2112_v1  ;;  %v1595_v24 = vpop.xlane.xlu0 %1594 }
 0x2fe   :  { %2113 = vlog2.f32 %v1595_v24 }
 0x2ff   :  { %v1655_v32 = vsub.f32 %v2490_v42, %v1625_v3 }
 0x301   :  { %1671 = vst [vmem:[#allocation11 + $0x8] sm:$0xff] %v1655_v32 }
 0x304   :  { %v2114_v5 = vpop.eup %2113 }
 0x305   :  { %v1627_v8 = vmul.f32 0.6931472, %v2114_v5  ;;  %v1597_v9 = vpop.xlane.xlu1 %1596 }
 0x306   :  { %2115 = vlog2.f32 %v1597_v9 }
 0x307   :  { %v1656_v4 = vsub.f32 %v2495_v50, %v1627_v8 }
 0x309   :  { %1672 = vst [vmem:[#allocation11 + $0x10] sm:$0xff] %v1656_v4 }
 0x30c   :  { %v2116_v10 = vpop.eup %2115 }
 0x30d   :  { %v1629_v12 = vmul.f32 0.6931472, %v2116_v10  ;;  %v1599_v59 = vpop.xlane.xlu2 %1598 }
 0x30e   :  { %2117 = vlog2.f32 %v1599_v59 }
 0x30f   :  { %v1657_v45 = vsub.f32 %v2500_v0, %v1629_v12 }
 0x311   :  { %1673 = vst [vmem:[#allocation11 + $0x18] sm:$0xff] %v1657_v45 }
 0x314   :  { %v2118_v35 = vpop.eup %2117 }
 0x315   :  { %v1631_v15 = vmul.f32 0.6931472, %v2118_v35  ;;  %v1601_v11 = vpop.xlane.xlu0 %1600 }
 0x316   :  { %2119 = vlog2.f32 %v1601_v11 }
 0x317   :  { %v1658_v42 = vsub.f32 %v2505_v7, %v1631_v15 }
 0x319   :  { %1674 = vst [vmem:[#allocation11 + $0x20] sm:$0xff] %v1658_v42 }
 0x31c   :  { %v2120_v49 = vpop.eup %2119 }
 0x31d   :  { %v1633_v18 = vmul.f32 0.6931472, %v2120_v49  ;;  %v1603_v20 = vpop.xlane.xlu1 %1602 }
 0x31e   :  { %2121 = vlog2.f32 %v1603_v20 }
 0x31f   :  { %v1659_v50 = vsub.f32 %v2511_v21, %v1633_v18 }
 0x321   :  { %1675 = vst [vmem:[#allocation11 + $0x28] sm:$0xff] %v1659_v50 }
 0x324   :  { %v2122_v19 = vpop.eup %2121 }
 0x325   :  { %v1635_v26 = vmul.f32 0.6931472, %v2122_v19  ;;  %v1605_v30 = vpop.xlane.xlu2 %1604 }
 0x326   :  { %2123 = vlog2.f32 %v1605_v30 }
 0x327   :  { %v1660_v0 = vsub.f32 %v2517_v2, %v1635_v26 }
 0x329   :  { %1676 = vst [vmem:[#allocation11 + $0x30] sm:$0xff] %v1660_v0 }
 0x32c   :  { %v2124_v33 = vpop.eup %2123 }
 0x32d   :  { %v1637_v22 = vmul.f32 0.6931472, %v2124_v33  ;;  %v1607_v38 = vpop.xlane.xlu0 %1606 }
 0x32e   :  { %2125 = vlog2.f32 %v1607_v38 }
 0x32f   :  { %v1661_v7 = vsub.f32 %v2523_v6, %v1637_v22 }
 0x331   :  { %1677 = vst [vmem:[#allocation11 + $0x38] sm:$0xff] %v1661_v7 }
 0x334   :  { %v2126_v40 = vpop.eup %2125 }
 0x335   :  { %v1639_v63 = vmul.f32 0.6931472, %v2126_v40  ;;  %v1609_v25 = vpop.xlane.xlu1 %1608 }
 0x336   :  { %2127 = vlog2.f32 %v1609_v25 }
 0x337   :  { %v1662_v21 = vsub.f32 %v2529_v13, %v1639_v63 }
 0x339   :  { %1678 = vst [vmem:[#allocation11 + $0x40] sm:$0xff] %v1662_v21 }
 0x33c   :  { %v2128_v14 = vpop.eup %2127 }
 0x33d   :  { %v1641_v43 = vmul.f32 0.6931472, %v2128_v14  ;;  %v1611_v46 = vpop.xlane.xlu2 %1610 }
 0x33e   :  { %2129 = vlog2.f32 %v1611_v46 }
 0x33f   :  { %v1663_v2 = vsub.f32 %v2535_v17, %v1641_v43 }
 0x341   :  { %1679 = vst [vmem:[#allocation11 + $0x48] sm:$0xff] %v1663_v2 }
 0x344   :  { %v2130_v28 = vpop.eup %2129 }
 0x345   :  { %v1643_v48 = vmul.f32 0.6931472, %v2130_v28  ;;  %v1613_v51 = vpop.xlane.xlu0 %1612 }
 0x346   :  { %2131 = vlog2.f32 %v1613_v51 }
 0x347   :  { %v1664_v6 = vsub.f32 %v2541_v23, %v1643_v48 }
 0x349   :  { %1680 = vst [vmem:[#allocation11 + $0x50] sm:$0xff] %v1664_v6 }
 0x34c   :  { %v2132_v52 = vpop.eup %2131 }
 0x34d   :  { %v1645_v31 = vmul.f32 0.6931472, %v2132_v52  ;;  %v1615_v54 = vpop.xlane.xlu1 %1614 }
 0x34e   :  { %2133 = vlog2.f32 %v1615_v54 }
 0x34f   :  { %v1665_v13 = vsub.f32 %v2547_v27, %v1645_v31 }
 0x351   :  { %1681 = vst [vmem:[#allocation11 + $0x58] sm:$0xff] %v1665_v13 }
 0x354   :  { %v2134_v55 = vpop.eup %2133 }
 0x355   :  { %v1647_v56 = vmul.f32 0.6931472, %v2134_v55  ;;  %v1617_v34 = vpop.xlane.xlu2 %1616 }
 0x356   :  { %2135 = vlog2.f32 %v1617_v34 }
 0x357   :  { %v1666_v17 = vsub.f32 %v2553_v41, %v1647_v56 }
 0x359   :  { %1682 = vst [vmem:[#allocation11 + $0x60] sm:$0xff] %v1666_v17 }
 0x35c   :  { %v2136_v57 = vpop.eup %2135 }
 0x35d   :  { %v1649_v29 = vmul.f32 0.6931472, %v2136_v57  ;;  %v1619_v39 = vpop.xlane.xlu0 %1618 }
 0x35e   :  { %2137 = vlog2.f32 %v1619_v39 }
 0x35f   :  { %v1667_v23 = vsub.f32 %v2559_v47, %v1649_v29 }
 0x361   :  { %1683 = vst [vmem:[#allocation11 + $0x68] sm:$0xff] %v1667_v23 }
 0x364   :  { %v2138_v37 = vpop.eup %2137 }
 0x365   :  { %v1651_v58 = vmul.f32 0.6931472, %v2138_v37  ;;  %v1621_v44 = vpop.xlane.xlu1 %1620 }
 0x366   :  { %2139 = vlog2.f32 %v1621_v44 }
 0x367   :  { %v1668_v27 = vsub.f32 %v2565_v53, %v1651_v58 }
 0x369   :  { %1684 = vst [vmem:[#allocation11 + $0x70] sm:$0xff] %v1668_v27 }
 0x36c   :  { %v2140_v41 = vpop.eup %2139 }
 0x36d   :  { %v1653_v60 = vmul.f32 0.6931472, %v2140_v41 }
 0x36f   :  { %v1669_v47 = vsub.f32 %v2571_v16, %v1653_v60 }
 0x371   :  { %1685 = vst [vmem:[#allocation11 + $0x78] sm:$0xff] %v1669_v47 }
 0x372   :  { %1698 = dma.vmem_to_hbm [thread:$0]  %s1691_s4, 2048, %s1693_s21, [#allocation4], %s2303_s22, %s2303_s22, %s2304_s23  }
 0x373   :  { %2291 = dma.done.wait [#allocation4], 2048  }
 0x374   :  { %2292 = vsyncadd [#allocation4], 4294965248 }
 0x375   :  { %1703 = vsyncpa [#allocation3], 1 }
 0x376   :  { %1704 = vsyncpa [#allocation6], 1 }
 0x377   :  { %1705 = vsyncpa [#allocation9], 1 }
 0x378   :  { %1706 = vsyncpa [#allocation4], 1 }

</bundles_post_ra>
